<compile_context>
chip_gen: v6e
topology: v6e:2x2x1
jax: 0.10.0
libtpu: 0.0.40
codegen_flags: <defaults>
</compile_context>

<pallas_src>
import functools

import jax
import jax.numpy as jnp
from jax.experimental import pallas as pl
from jax.experimental.pallas import tpu as pltpu


def _round_up(v: int, m: int) -> int:
    return (v + m - 1) // m * m


def fcn_kernel(xt_ref, w1t_ref, b1_ref, w2t_ref, b2_ref, o_ref):
    # xt:  (IN, TB) bf16      w1t: (Hp, IN) bf16     b1: (Hp, 1) f32
    # w2t: (Op, Hp) bf16      b2:  (Op, 1)  f32      o:  (Op, TB) f32

    # Linear 1: (Hp, IN) @ (IN, TB) -> (Hp, TB), f32 accumulation on the MXU.
    h = jnp.dot(w1t_ref[...], xt_ref[...], preferred_element_type=jnp.float32)
    h = h + b1_ref[...]                          # lane-broadcast bias
    h = jnp.minimum(jnp.maximum(h, 0.0), 6.0)    # ReLU6 (f32 VPU, v5e-safe)

    # Linear 2: (Op, Hp) @ (Hp, TB) -> (Op, TB).  N = TB fills the MXU lanes.
    logits = (
        jnp.dot(w2t_ref[...], h.astype(jnp.bfloat16),
                preferred_element_type=jnp.float32)
        + b2_ref[...]
    )

    # Softmax over the feature axis (sublanes).  Padded feature rows carry a
    # -1e30 bias, so exp underflows to 0 and they drop out of the sum.
    m = jnp.max(logits, axis=0, keepdims=True)
    e = jnp.exp(logits - m)
    denom = jnp.sum(e, axis=0, keepdims=True)
    o_ref[...] = e / denom                       # exact normalization


def prepare_params(w1, b1, w2, b2):
    """One-time weight prep (hoisted out of the forward): pad to lane-dense
    sizes, transpose to the (feature, batch) kernel layout, cast MXU operands
    to bf16.  w1: (IN, H), b1: (H,)|(1,H), w2: (H, O), b2: (O,)|(1,O)."""
    IN, H = w1.shape
    O = w2.shape[1]
    Hp = _round_up(H, 128)              # 1000 -> 1024: lane-dense hidden
    Op = _round_up(max(O, 128), 128)    # >=128 feature rows

    # Zero-pad hidden dim (exact: ReLU6(0)=0 meets zero w2 columns).
    w1t = jnp.pad(w1, ((0, 0), (0, Hp - H))).T.astype(jnp.bfloat16)       # (Hp, IN)
    b1p = jnp.pad(b1.reshape(1, -1), ((0, 0), (0, Hp - H))).T.astype(jnp.float32)  # (Hp, 1)
    # Pad output dim; padded b2 rows get -1e30 so softmax ignores them (keep f32!).
    w2t = jnp.pad(w2, ((0, Hp - H), (0, Op - O))).T.astype(jnp.bfloat16)  # (Op, Hp)
    b2p = jnp.pad(b2.reshape(1, -1).astype(jnp.float32),
                  ((0, 0), (0, Op - O)), constant_values=-1e30).T          # (Op, 1)
    return w1t, b1p, w2t, b2p


def _batch_tiling(B: int, tb: int):
    """Pick (Bp, TB).  TB is a multiple of 128 (lane axis of the transposed
    output), and we force >=2 balanced grid steps whenever the padded batch
    allows it so the parallel batch axis shards across both v7x TensorCores."""
    Bp0 = _round_up(max(B, 1), 128)
    n_steps = max(pl.cdiv(Bp0, tb), 2 if Bp0 >= 256 else 1)
    TB = _round_up(pl.cdiv(Bp0, n_steps), 128)
    return n_steps * TB, TB


@functools.partial(jax.jit, static_argnames=("out_features", "tb"))
def fcn_forward(x, w1t, b1p, w2t, b2p, *, out_features, tb=1024):
    """x: (B, IN) f32; padded/transposed params from prepare_params()."""
    B, IN = x.shape
    Hp = w1t.shape[0]
    Op = w2t.shape[0]
    Bp, TB = _batch_tiling(B, tb)

    # Single fused pad + transpose + bf16 cast: one pass over x.
    xt = jnp.pad(x, ((0, Bp - B), (0, 0))).T.astype(jnp.bfloat16)   # (IN, Bp)

    flops = 2 * Bp * (IN * Hp + Hp * Op)
    bytes_accessed = (xt.size * 2 + w1t.size * 2 + w2t.size * 2
                      + b1p.size * 4 + b2p.size * 4 + Bp * Op * 4)

    out_t = pl.pallas_call(
        fcn_kernel,
        out_shape=jax.ShapeDtypeStruct((Op, Bp), jnp.float32),
        grid=(Bp // TB,),
        in_specs=[
            pl.BlockSpec((IN, TB), lambda i: (0, i)),   # streamed activations
            pl.BlockSpec((Hp, IN), lambda i: (0, 0)),   # resident weights
            pl.BlockSpec((Hp, 1), lambda i: (0, 0)),
            pl.BlockSpec((Op, Hp), lambda i: (0, 0)),
            pl.BlockSpec((Op, 1), lambda i: (0, 0)),
        ],
        out_specs=pl.BlockSpec((Op, TB), lambda i: (0, i)),
        compiler_params=pltpu.CompilerParams(
            dimension_semantics=("parallel",),
            # NOTE: raise vmem_limit_bytes if tb is pushed to 2048 on v5e.
        ),
        cost_estimate=pl.CostEstimate(
            flops=flops,
            transcendentals=Bp * Op,
            bytes_accessed=bytes_accessed,
        ),
    )(xt, w1t, b1p, w2t, b2p)

    return out_t[:out_features, :B].T


def init_params(key, input_number, m_k, n_k, hidden=1000):
    """PyTorch-default-style uniform(-1/sqrt(fan_in), 1/sqrt(fan_in)) init."""
    k1, k2, k3, k4 = jax.random.split(key, 4)
    out = m_k * n_k
    lim1 = 1.0 / jnp.sqrt(jnp.float32(input_number))
    lim2 = 1.0 / jnp.sqrt(jnp.float32(hidden))
    # stored pre-transposed: (in, out) so the math is x @ W
    w1 = jax.random.uniform(k1, (input_number, hidden), jnp.float32, -lim1, lim1)
    b1 = jax.random.uniform(k2, (1, hidden), jnp.float32, -lim1, lim1)
    w2 = jax.random.uniform(k3, (hidden, out), jnp.float32, -lim2, lim2)
    b2 = jax.random.uniform(k4, (1, out), jnp.float32, -lim2, lim2)
    return w1, b1, w2, b2


def fcn_reference(x, w1, b1, w2, b2):
    h = jnp.clip(x @ w1 + b1, 0.0, 6.0)
    logits = h @ w2 + b2
    return jax.nn.softmax(logits, axis=-1)


if __name__ == "__main__":
    key = jax.random.PRNGKey(0)
    k_x, k_p = jax.random.split(key)

    batch = 8
    input_number = 32
    m_k, n_k = 4, 4  # output dim = 16

    x = jax.random.normal(k_x, (batch, input_number), jnp.float32)
    w1, b1, w2, b2 = init_params(k_p, input_number, m_k, n_k)

    # One-time weight prep (hoisted out of the jitted forward).
    w1t, b1p, w2t, b2p = prepare_params(w1, b1, w2, b2)
    w1t, b1p, w2t, b2p = jax.block_until_ready((w1t, b1p, w2t, b2p))

    out = fcn_forward(x, w1t, b1p, w2t, b2p, out_features=m_k * n_k)
    out = jax.block_until_ready(out)

    assert out.shape == (batch, m_k * n_k)
    # softmax rows sum to 1 (exact divide in the kernel)
    assert jnp.allclose(jnp.sum(out, axis=-1), 1.0, atol=1e-4)
    # matches pure-JAX reference within bf16-matmul tolerance
    ref = fcn_reference(x, w1, b1, w2, b2)
    assert jnp.allclose(out, ref, atol=2e-2), float(jnp.max(jnp.abs(out - ref)))

    print("KERNEL_OK")
</pallas_src>

<mosaic_0001>
module attributes {stable_mosaic.version = 11 : i64} {
  func.func @fcn_kernel(%arg0: i32, %arg1: memref<32x128xbf16, #tpu.memory_space<vmem>>, %arg2: memref<1024x32xbf16, #tpu.memory_space<vmem>>, %arg3: memref<1024x1xf32, #tpu.memory_space<vmem>>, %arg4: memref<128x1024xbf16, #tpu.memory_space<vmem>>, %arg5: memref<128x1xf32, #tpu.memory_space<vmem>>, %arg6: memref<128x128xf32, #tpu.memory_space<vmem>>) attributes {dimension_semantics = [#tpu.dimension_semantics<parallel>], iteration_bounds = array<i64: 1>, scalar_prefetch = 0 : i64, scratch_operands = 0 : i64, tpu.core_type = #tpu.core_type<tc>, window_params = [{transform_indices = @transform_0, window_bounds = array<i64: 32, 128>}, {pipeline_mode = #tpu.pipeline_mode<synchronous>, transform_indices = @transform_1, window_bounds = array<i64: 1024, 32>}, {pipeline_mode = #tpu.pipeline_mode<synchronous>, transform_indices = @transform_2, window_bounds = array<i64: 1024, 1>}, {pipeline_mode = #tpu.pipeline_mode<synchronous>, transform_indices = @transform_3, window_bounds = array<i64: 128, 1024>}, {pipeline_mode = #tpu.pipeline_mode<synchronous>, transform_indices = @transform_4, window_bounds = array<i64: 128, 1>}, {transform_indices = @transform_5, window_bounds = array<i64: 128, 128>}]} {
    %c0 = arith.constant 0 : index
    %c0_0 = arith.constant 0 : index
    %0 = vector.load %arg2[%c0, %c0_0] : memref<1024x32xbf16, #tpu.memory_space<vmem>>, vector<1024x32xbf16>
    %c0_1 = arith.constant 0 : index
    %c0_2 = arith.constant 0 : index
    %1 = vector.load %arg1[%c0_1, %c0_2] : memref<32x128xbf16, #tpu.memory_space<vmem>>, vector<32x128xbf16>
    %cst = arith.constant dense<0.000000e+00> : vector<1024x128xf32>
    %2 = tpu.matmul %0, %1, %cst {dimension_numbers = #tpu.dot_dimension_numbers<[1], [0], [0], [1], [0, 0, 1, 1], [], []>} : vector<1024x32xbf16>, vector<32x128xbf16>, vector<1024x128xf32> -> vector<1024x128xf32>
    %c0_3 = arith.constant 0 : index
    %c0_4 = arith.constant 0 : index
    %3 = vector.load %arg3[%c0_3, %c0_4] : memref<1024x1xf32, #tpu.memory_space<vmem>>, vector<1024x1xf32>
    %4 = vector.broadcast %3 : vector<1024x1xf32> to vector<1024x128xf32>
    %5 = arith.addf %2, %4 : vector<1024x128xf32>
    %cst_5 = arith.constant 0.000000e+00 : f32
    %6 = vector.broadcast %cst_5 : f32 to vector<1024x128xf32>
    %7 = arith.maximumf %5, %6 : vector<1024x128xf32>
    %cst_6 = arith.constant 6.000000e+00 : f32
    %8 = vector.broadcast %cst_6 : f32 to vector<1024x128xf32>
    %9 = arith.minimumf %7, %8 : vector<1024x128xf32>
    %c0_7 = arith.constant 0 : index
    %c0_8 = arith.constant 0 : index
    %10 = vector.load %arg4[%c0_7, %c0_8] : memref<128x1024xbf16, #tpu.memory_space<vmem>>, vector<128x1024xbf16>
    %11 = arith.truncf %9 : vector<1024x128xf32> to vector<1024x128xbf16>
    %cst_9 = arith.constant dense<0.000000e+00> : vector<128x128xf32>
    %12 = tpu.matmul %10, %11, %cst_9 {dimension_numbers = #tpu.dot_dimension_numbers<[1], [0], [0], [1], [0, 0, 1, 1], [], []>} : vector<128x1024xbf16>, vector<1024x128xbf16>, vector<128x128xf32> -> vector<128x128xf32>
    %c0_10 = arith.constant 0 : index
    %c0_11 = arith.constant 0 : index
    %13 = vector.load %arg5[%c0_10, %c0_11] : memref<128x1xf32, #tpu.memory_space<vmem>>, vector<128x1xf32>
    %14 = vector.broadcast %13 : vector<128x1xf32> to vector<128x128xf32>
    %15 = arith.addf %12, %14 : vector<128x128xf32>
    %cst_12 = arith.constant dense<0xFF800000> : vector<128xf32>
    %16 = vector.multi_reduction <maximumf>, %15, %cst_12 [0] : vector<128x128xf32> to vector<128xf32>
    %17 = vector.shape_cast %16 : vector<128xf32> to vector<1x128xf32>
    %18 = vector.broadcast %17 : vector<1x128xf32> to vector<128x128xf32>
    %19 = arith.subf %15, %18 : vector<128x128xf32>
    %20 = math.exp %19 : vector<128x128xf32>
    %cst_13 = arith.constant dense<0.000000e+00> : vector<128xf32>
    %21 = vector.multi_reduction <add>, %20, %cst_13 [0] : vector<128x128xf32> to vector<128xf32>
    %22 = vector.shape_cast %21 : vector<128xf32> to vector<1x128xf32>
    %23 = vector.broadcast %22 : vector<1x128xf32> to vector<128x128xf32>
    %24 = arith.divf %20, %23 : vector<128x128xf32>
    %c0_14 = arith.constant 0 : index
    %c0_15 = arith.constant 0 : index
    %25 = vector.load %arg6[%c0_14, %c0_15] : memref<128x128xf32, #tpu.memory_space<vmem>>, vector<128x128xf32>
    tpu.vector_store %arg6[%c0_14, %c0_15], %24 {strides = array<i32>} : memref<128x128xf32, #tpu.memory_space<vmem>>, vector<128x128xf32>,
    return
  }
  func.func @transform_0(%arg0: i32) -> (i32, i32) {
    %c0_i32 = arith.constant 0 : i32
    %c0_i32_0 = arith.constant 0 : i32
    return %c0_i32, %arg0 : i32, i32
  }
  func.func @transform_1(%arg0: i32) -> (i32, i32) {
    %c0_i32 = arith.constant 0 : i32
    %c0_i32_0 = arith.constant 0 : i32
    %c0_i32_1 = arith.constant 0 : i32
    return %c0_i32, %c0_i32_0 : i32, i32
  }
  func.func @transform_2(%arg0: i32) -> (i32, i32) {
    %c0_i32 = arith.constant 0 : i32
    %c0_i32_0 = arith.constant 0 : i32
    %c0_i32_1 = arith.constant 0 : i32
    return %c0_i32, %c0_i32_0 : i32, i32
  }
  func.func @transform_3(%arg0: i32) -> (i32, i32) {
    %c0_i32 = arith.constant 0 : i32
    %c0_i32_0 = arith.constant 0 : i32
    %c0_i32_1 = arith.constant 0 : i32
    return %c0_i32, %c0_i32_0 : i32, i32
  }
  func.func @transform_4(%arg0: i32) -> (i32, i32) {
    %c0_i32 = arith.constant 0 : i32
    %c0_i32_0 = arith.constant 0 : i32
    %c0_i32_1 = arith.constant 0 : i32
    return %c0_i32, %c0_i32_0 : i32, i32
  }
  func.func @transform_5(%arg0: i32) -> (i32, i32) {
    %c0_i32 = arith.constant 0 : i32
    %c0_i32_0 = arith.constant 0 : i32
    return %c0_i32, %arg0 : i32, i32
  }
}

</mosaic_0001>

<bundles_post_ra>
// kernel: fcn_forward.1
= control target key start
LH: loop header
LB: loop body
LE: loop exit
PB: predicated region body
PF: predicated region fallthrough
CT: control target
= control target key end

     0   :  { %v4073_v0 = vmov 0   ;;  %vm1253_vm0 = vcmask 261120   ;;  %s6045_s2 = inlined_call_operand.vmem [shape: f32[1024,1], index: 2, kind: input, shape index: {}]   ;;  %s6046_s0 = inlined_call_operand.vmem [shape: bf16[32,128], index: 0, kind: input, shape index: {}]   ;;  %s6047_s1 = inlined_call_operand.vmem [shape: bf16[1024,32], index: 1, kind: input, shape index: {}]   ;;  %s6048_s3 = inlined_call_operand.vmem [shape: bf16[128,1024], index: 3, kind: input, shape index: {}]   ;;  %s6049_s4 = inlined_call_operand.vmem [shape: f32[128,1], index: 4, kind: input, shape index: {}]   ;;  %s6050_s5 = inlined_call_operand.vmem [shape: f32[128,128], index: 5, kind: output, shape index: {}]  }
   0x1   :  { %3972 = vset.pattern.permute.xlu1 %v4073_v0  ;;  %3971 = vset.pattern.permute.xlu0 %v4073_v0  ;;  %v183_v1 = vld [vmem:[%s6045_s2 + $0xf0] sm:$0xff]  ;;  %v3973_v3 = vld [vmem:[%s6046_s0 + $0x8] sm:$0xff]   ;;  %v184_v4 = vld [vmem:[%s6045_s2 + $0xf8] sm:$0xff] }
   0x2   :  { %v167_v2 = vld [vmem:[%s6045_s2 + $0x70] sm:$0xff]  ;;  %433 = vperm.xlu0 %3971, %v183_v1   ;;  %v168_v5 = vld [vmem:[%s6045_s2 + $0x78] sm:$0xff]  ;;  %3822 = vmatprep.subr.bf16.mxu0 %v3973_v3  ;;  %v3974_v6 = vld [vmem:[%s6046_s0] sm:$0xff]  }
   0x3   :  { %353 = vperm.xlu1 %3972, %v167_v2   ;;  %3823 = vmatpush3.bf16.msra.mxu0 %v3973_v3  ;;  %v3975_v7 = vld [vmem:[%s6047_s1] sm:$0xff]   ;;  %v182_v9 = vld [vmem:[%s6045_s2 + $0xe8] sm:$0xff]  ;;  %v3977_v11 = vld [vmem:[%s6047_s1 + $0x10] sm:$0xff]  }
   0x4   :  { %3824 = vmatprep.subr.bf16.mxu0 %v3974_v6  ;;  %v181_v8 = vld [vmem:[%s6045_s2 + $0xe0] sm:$0xff]  ;;  %3826 = vmatprep.mubr.msk.bf16.mxu0 %vm1253_vm0, %v3975_v7  ;;  %v3976_v10 = vld [vmem:[%s6047_s1 + $0x8] sm:$0xff]   ;;  %v180_v14 = vld [vmem:[%s6045_s2 + $0xd8] sm:$0xff] }
   0x5   :  { %v166_v12 = vld [vmem:[%s6045_s2 + $0x68] sm:$0xff]  ;;  %v165_v13 = vld [vmem:[%s6045_s2 + $0x60] sm:$0xff]  ;;  %v179_v15 = vld [vmem:[%s6045_s2 + $0xd0] sm:$0xff] }
   0x6   :  { %438 = vperm.xlu0 %3971, %v184_v4   ;;  %v3978_v16 = vld [vmem:[%s6047_s1 + $0x18] sm:$0xff]   ;;  %v3979_v17 = vld [vmem:[%s6047_s1 + $0x20] sm:$0xff]   ;;  %v163_v19 = vld [vmem:[%s6045_s2 + $0x50] sm:$0xff] }
   0x7   :  { %358 = vperm.xlu1 %3972, %v168_v5   ;;  %3825 = vmatpush3.bf16.msra.mxu0 %v3974_v6  ;;  %v164_v18 = vld [vmem:[%s6045_s2 + $0x58] sm:$0xff]  ;;  %v178_v20 = vld [vmem:[%s6045_s2 + $0xc8] sm:$0xff]  ;;  %v177_v21 = vld [vmem:[%s6045_s2 + $0xc0] sm:$0xff] }
   0x8   :  { %v3980_v22 = vld [vmem:[%s6047_s1 + $0x28] sm:$0xff]   ;;  %v3981_v23 = vld [vmem:[%s6047_s1 + $0x30] sm:$0xff]   ;;  %v161_v25 = vld [vmem:[%s6045_s2 + $0x40] sm:$0xff] }
   0x9   :  { %v162_v24 = vld [vmem:[%s6045_s2 + $0x48] sm:$0xff]  ;;  %v176_v26 = vld [vmem:[%s6045_s2 + $0xb8] sm:$0xff]  ;;  %v175_v27 = vld [vmem:[%s6045_s2 + $0xb0] sm:$0xff] }
   0xa   :  { %423 = vperm.xlu0 %3971, %v181_v8   ;;  %3827 = vmatmul.mubr.msk.bf16.vlgmr.msra.gmra.mxu0 %vm1253_vm0, %v3976_v10  ;;  %v3982_v28 = vld [vmem:[%s6047_s1 + $0x38] sm:$0xff]   ;;  %v3983_v29 = vld [vmem:[%s6047_s1 + $0x40] sm:$0xff]   ;;  %v159_v31 = vld [vmem:[%s6045_s2 + $0x30] sm:$0xff] }
   0xb   :  { %428 = vperm.xlu1 %3972, %v182_v9   ;;  %3830 = vmatprep.mubr.msk.bf16.mxu0 %vm1253_vm0, %v3977_v11  ;;  %v160_v30 = vld [vmem:[%s6045_s2 + $0x38] sm:$0xff]  ;;  %v174_v32 = vld [vmem:[%s6045_s2 + $0xa8] sm:$0xff]  ;;  %v173_v33 = vld [vmem:[%s6045_s2 + $0xa0] sm:$0xff] }
   0xc   :  { %v3984_v34 = vld [vmem:[%s6047_s1 + $0x48] sm:$0xff]   ;;  %v3985_v35 = vld [vmem:[%s6047_s1 + $0x50] sm:$0xff]   ;;  %v157_v37 = vld [vmem:[%s6045_s2 + $0x20] sm:$0xff] }
   0xd   :  { %v158_v36 = vld [vmem:[%s6045_s2 + $0x28] sm:$0xff]  ;;  %v172_v38 = vld [vmem:[%s6045_s2 + $0x98] sm:$0xff]  ;;  %v171_v39 = vld [vmem:[%s6045_s2 + $0x90] sm:$0xff] }
   0xe   :  { %343 = vperm.xlu0 %3971, %v165_v13   ;;  %v3986_v40 = vld [vmem:[%s6047_s1 + $0x58] sm:$0xff]   ;;  %v3987_v41 = vld [vmem:[%s6047_s1 + $0x60] sm:$0xff]   ;;  %v155_v43 = vld [vmem:[%s6045_s2 + $0x10] sm:$0xff] }
   0xf   :  { %348 = vperm.xlu1 %3972, %v166_v12   ;;  %v156_v42 = vld [vmem:[%s6045_s2 + $0x18] sm:$0xff]  ;;  %v170_v44 = vld [vmem:[%s6045_s2 + $0x88] sm:$0xff]  ;;  %v169_v45 = vld [vmem:[%s6045_s2 + $0x80] sm:$0xff] }
  0x10   :  { %v3988_v46 = vld [vmem:[%s6047_s1 + $0x68] sm:$0xff]   ;;  %v3989_v47 = vld [vmem:[%s6047_s1 + $0x70] sm:$0xff]   ;;  %v153_v49 = vld [vmem:[%s6045_s2] sm:$0xff] }
  0x11   :  { %v154_v48 = vld [vmem:[%s6045_s2 + $0x8] sm:$0xff]  ;;  %v216_v50 = vld [vmem:[%s6045_s2 + $0x1f8] sm:$0xff]  ;;  %v215_v51 = vld [vmem:[%s6045_s2 + $0x1f0] sm:$0xff] }
  0x12   :  { %413 = vperm.xlu0 %3971, %v179_v15   ;;  %3831 = vmatmul.mubr.msk.bf16.gmra.mxu0 %vm1253_vm0, %v3978_v16  ;;  %v3990_v52 = vld [vmem:[%s6047_s1 + $0x78] sm:$0xff]   ;;  %v3991_v53 = vld [vmem:[%s6047_s1 + $0x80] sm:$0xff]   ;;  %v199_v55 = vld [vmem:[%s6045_s2 + $0x170] sm:$0xff] }
  0x13   :  { %418 = vperm.xlu1 %3972, %v180_v14   ;;  %3834 = vmatprep.mubr.msk.bf16.mxu0 %vm1253_vm0, %v3979_v17  ;;  %v200_v54 = vld [vmem:[%s6045_s2 + $0x178] sm:$0xff]  ;;  %v214_v56 = vld [vmem:[%s6045_s2 + $0x1e8] sm:$0xff]  ;;  %v213_v57 = vld [vmem:[%s6045_s2 + $0x1e0] sm:$0xff] }
  0x14   :  { %v3992_v58 = vld [vmem:[%s6047_s1 + $0x88] sm:$0xff]   ;;  %v3993_v59 = vld [vmem:[%s6047_s1 + $0x90] sm:$0xff]   ;;  %v197_v61 = vld [vmem:[%s6045_s2 + $0x160] sm:$0xff] }
  0x15   :  { %v198_v60 = vld [vmem:[%s6045_s2 + $0x168] sm:$0xff]  ;;  %v212_v62 = vld [vmem:[%s6045_s2 + $0x1d8] sm:$0xff]  ;;  %v211_v63 = vld [vmem:[%s6045_s2 + $0x1d0] sm:$0xff] }
  0x16   :  { %333 = vperm.xlu0 %3971, %v163_v19   ;;  %v3994_v0 = vld [vmem:[%s6047_s1 + $0x98] sm:$0xff]   ;;  %v3995_v1 = vld [vmem:[%s6047_s1 + $0xa0] sm:$0xff]   ;;  %v195_v3 = vld [vmem:[%s6045_s2 + $0x150] sm:$0xff] }
  0x17   :  { %338 = vperm.xlu1 %3972, %v164_v18   ;;  %v196_v2 = vld [vmem:[%s6045_s2 + $0x158] sm:$0xff]  ;;  %v210_v4 = vld [vmem:[%s6045_s2 + $0x1c8] sm:$0xff]  ;;  %v209_v5 = vld [vmem:[%s6045_s2 + $0x1c0] sm:$0xff] }
  0x18   :  { %v3996_v6 = vld [vmem:[%s6047_s1 + $0xa8] sm:$0xff]   ;;  %v3997_v7 = vld [vmem:[%s6047_s1 + $0xb0] sm:$0xff]   ;;  %v193_v9 = vld [vmem:[%s6045_s2 + $0x140] sm:$0xff] }
  0x19   :  { %v194_v8 = vld [vmem:[%s6045_s2 + $0x148] sm:$0xff]  ;;  %v208_v10 = vld [vmem:[%s6045_s2 + $0x1b8] sm:$0xff]  ;;  %v207_v11 = vld [vmem:[%s6045_s2 + $0x1b0] sm:$0xff] }
  0x1a   :  { %403 = vperm.xlu0 %3971, %v177_v21   ;;  %3835 = vmatmul.mubr.msk.bf16.gmra.mxu0 %vm1253_vm0, %v3980_v22  ;;  %v3998_v12 = vld [vmem:[%s6047_s1 + $0xb8] sm:$0xff]   ;;  %v3999_v13 = vld [vmem:[%s6047_s1 + $0xc0] sm:$0xff]   ;;  %v191_v15 = vld [vmem:[%s6045_s2 + $0x130] sm:$0xff] }
  0x1b   :  { %408 = vperm.xlu1 %3972, %v178_v20   ;;  %3838 = vmatprep.mubr.msk.bf16.mxu0 %vm1253_vm0, %v3981_v23  ;;  %v192_v14 = vld [vmem:[%s6045_s2 + $0x138] sm:$0xff]  ;;  %v206_v16 = vld [vmem:[%s6045_s2 + $0x1a8] sm:$0xff]  ;;  %v205_v17 = vld [vmem:[%s6045_s2 + $0x1a0] sm:$0xff] }
  0x1c   :  { %v4000_v18 = vld [vmem:[%s6047_s1 + $0xc8] sm:$0xff]   ;;  %v4001_v19 = vld [vmem:[%s6047_s1 + $0xd0] sm:$0xff]   ;;  %v189_v21 = vld [vmem:[%s6045_s2 + $0x120] sm:$0xff] }
  0x1d   :  { %v190_v20 = vld [vmem:[%s6045_s2 + $0x128] sm:$0xff]  ;;  %v204_v22 = vld [vmem:[%s6045_s2 + $0x198] sm:$0xff]  ;;  %v203_v23 = vld [vmem:[%s6045_s2 + $0x190] sm:$0xff] }
  0x1e   :  { %323 = vperm.xlu0 %3971, %v161_v25   ;;  %v4003_v25 = vld [vmem:[%s6047_s1 + $0xe0] sm:$0xff]  }
  0x1f   :  { %328 = vperm.xlu1 %3972, %v162_v24   ;;  %v4002_v24 = vld [vmem:[%s6047_s1 + $0xd8] sm:$0xff]  }
  0x22   :  { %393 = vperm.xlu0 %3971, %v175_v27   ;;  %3839 = vmatmul.mubr.msk.bf16.gmra.mxu0 %vm1253_vm0, %v3982_v28  ;;  %v187_v27 = vld [vmem:[%s6045_s2 + $0x110] sm:$0xff]  ;;  %v202_v28 = vld [vmem:[%s6045_s2 + $0x188] sm:$0xff] }
  0x23   :  { %398 = vperm.xlu1 %3972, %v176_v26   ;;  %3842 = vmatprep.mubr.msk.bf16.mxu0 %vm1253_vm0, %v3983_v29  ;;  %v188_v26 = vld [vmem:[%s6045_s2 + $0x118] sm:$0xff]  ;;  %v201_v29 = vld [vmem:[%s6045_s2 + $0x180] sm:$0xff] }
  0x26   :  { %313 = vperm.xlu0 %3971, %v159_v31   ;;  %v4005_v31 = vld [vmem:[%s6047_s1 + $0xf0] sm:$0xff]  }
  0x27   :  { %318 = vperm.xlu1 %3972, %v160_v30   ;;  %v4004_v30 = vld [vmem:[%s6047_s1 + $0xe8] sm:$0xff]  }
  0x2a   :  { %383 = vperm.xlu0 %3971, %v173_v33   ;;  %3843 = vmatmul.mubr.msk.bf16.gmra.mxu0 %vm1253_vm0, %v3984_v34  ;;  %v185_v33 = vld [vmem:[%s6045_s2 + $0x100] sm:$0xff] }
  0x2b   :  { %388 = vperm.xlu1 %3972, %v174_v32   ;;  %3846 = vmatprep.mubr.msk.bf16.mxu0 %vm1253_vm0, %v3985_v35  ;;  %v186_v32 = vld [vmem:[%s6045_s2 + $0x108] sm:$0xff] }
  0x2e   :  { %303 = vperm.xlu0 %3971, %v157_v37   ;;  %v247_v37 = vld [vmem:[%s6045_s2 + $0x2f0] sm:$0xff] }
  0x2f   :  { %308 = vperm.xlu1 %3972, %v158_v36   ;;  %v248_v36 = vld [vmem:[%s6045_s2 + $0x2f8] sm:$0xff] }
  0x32   :  { %373 = vperm.xlu0 %3971, %v171_v39   ;;  %3847 = vmatmul.mubr.msk.bf16.gmra.mxu0 %vm1253_vm0, %v3986_v40 }
  0x33   :  { %378 = vperm.xlu1 %3972, %v172_v38   ;;  %3850 = vmatprep.mubr.msk.bf16.mxu0 %vm1253_vm0, %v3987_v41  ;;  %v4006_v38 = vld [vmem:[%s6047_s1 + $0xf8] sm:$0xff]   ;;  %v4007_v41 = vld [vmem:[%s6047_s1 + $0x100] sm:$0xff]  }
  0x36   :  { %293 = vperm.xlu0 %3971, %v155_v43   ;;  %v231_v43 = vld [vmem:[%s6045_s2 + $0x270] sm:$0xff] }
  0x37   :  { %298 = vperm.xlu1 %3972, %v156_v42   ;;  %v232_v42 = vld [vmem:[%s6045_s2 + $0x278] sm:$0xff] }
  0x3a   :  { %363 = vperm.xlu0 %3971, %v169_v45   ;;  %3851 = vmatmul.mubr.msk.bf16.gmra.mxu0 %vm1253_vm0, %v3988_v46  ;;  %v246_v46 = vld [vmem:[%s6045_s2 + $0x2e8] sm:$0xff] }
  0x3b   :  { %368 = vperm.xlu1 %3972, %v170_v44   ;;  %3854 = vmatprep.mubr.msk.bf16.mxu0 %vm1253_vm0, %v3989_v47  ;;  %v245_v47 = vld [vmem:[%s6045_s2 + $0x2e0] sm:$0xff] }
  0x3e   :  { %283 = vperm.xlu0 %3971, %v153_v49  }
  0x3f   :  { %288 = vperm.xlu1 %3972, %v154_v48   ;;  %v4008_v48 = vld [vmem:[%s6047_s1 + $0x108] sm:$0xff]  }
  0x42   :  { %593 = vperm.xlu0 %3971, %v215_v51   ;;  %3855 = vmatmul.mubr.msk.bf16.gmra.mxu0 %vm1253_vm0, %v3990_v52  ;;  %v4009_v51 = vld [vmem:[%s6047_s1 + $0x110] sm:$0xff]   ;;  %v230_v52 = vld [vmem:[%s6045_s2 + $0x268] sm:$0xff] }
  0x43   :  { %598 = vperm.xlu1 %3972, %v216_v50   ;;  %3858 = vmatprep.mubr.msk.bf16.mxu0 %vm1253_vm0, %v3991_v53  ;;  %v229_v53 = vld [vmem:[%s6045_s2 + $0x260] sm:$0xff] }
  0x46   :  { %513 = vperm.xlu0 %3971, %v199_v55  }
  0x47   :  { %518 = vperm.xlu1 %3972, %v200_v54  }
  0x4a   :  { %583 = vperm.xlu0 %3971, %v213_v57   ;;  %3859 = vmatmul.mubr.msk.bf16.gmra.mxu0 %vm1253_vm0, %v3992_v58  ;;  %v243_v57 = vld [vmem:[%s6045_s2 + $0x2d0] sm:$0xff]  ;;  %v4010_v58 = vld [vmem:[%s6047_s1 + $0x118] sm:$0xff]  }
  0x4b   :  { %588 = vperm.xlu1 %3972, %v214_v56   ;;  %3862 = vmatprep.mubr.msk.bf16.mxu0 %vm1253_vm0, %v3993_v59  ;;  %v244_v56 = vld [vmem:[%s6045_s2 + $0x2d8] sm:$0xff] }
  0x4e   :  { %503 = vperm.xlu0 %3971, %v197_v61   ;;  %v4011_v61 = vld [vmem:[%s6047_s1 + $0x120] sm:$0xff]  }
  0x4f   :  { %508 = vperm.xlu1 %3972, %v198_v60  }
  0x52   :  { %573 = vperm.xlu0 %3971, %v211_v63   ;;  %3863 = vmatmul.mubr.msk.bf16.gmra.mxu0 %vm1253_vm0, %v3994_v0  ;;  %v227_v63 = vld [vmem:[%s6045_s2 + $0x250] sm:$0xff] }
  0x53   :  { %578 = vperm.xlu1 %3972, %v212_v62   ;;  %3866 = vmatprep.mubr.msk.bf16.mxu0 %vm1253_vm0, %v3995_v1  ;;  %v228_v62 = vld [vmem:[%s6045_s2 + $0x258] sm:$0xff] }
  0x56   :  { %493 = vperm.xlu0 %3971, %v195_v3   ;;  %v241_v3 = vld [vmem:[%s6045_s2 + $0x2c0] sm:$0xff] }
  0x57   :  { %498 = vperm.xlu1 %3972, %v196_v2   ;;  %v242_v2 = vld [vmem:[%s6045_s2 + $0x2c8] sm:$0xff] }
  0x5a   :  { %563 = vperm.xlu0 %3971, %v209_v5   ;;  %3867 = vmatmul.mubr.msk.bf16.gmra.mxu0 %vm1253_vm0, %v3996_v6 }
  0x5b   :  { %568 = vperm.xlu1 %3972, %v210_v4   ;;  %3870 = vmatprep.mubr.msk.bf16.mxu0 %vm1253_vm0, %v3997_v7  ;;  %v4012_v4 = vld [vmem:[%s6047_s1 + $0x128] sm:$0xff]   ;;  %v4013_v7 = vld [vmem:[%s6047_s1 + $0x130] sm:$0xff]  }
  0x5e   :  { %483 = vperm.xlu0 %3971, %v193_v9   ;;  %v225_v9 = vld [vmem:[%s6045_s2 + $0x240] sm:$0xff] }
  0x5f   :  { %488 = vperm.xlu1 %3972, %v194_v8   ;;  %v226_v8 = vld [vmem:[%s6045_s2 + $0x248] sm:$0xff] }
  0x62   :  { %553 = vperm.xlu0 %3971, %v207_v11   ;;  %3871 = vmatmul.mubr.msk.bf16.gmra.mxu0 %vm1253_vm0, %v3998_v12  ;;  %v240_v12 = vld [vmem:[%s6045_s2 + $0x2b8] sm:$0xff] }
  0x63   :  { %558 = vperm.xlu1 %3972, %v208_v10   ;;  %3874 = vmatprep.mubr.msk.bf16.mxu0 %vm1253_vm0, %v3999_v13  ;;  %v239_v13 = vld [vmem:[%s6045_s2 + $0x2b0] sm:$0xff] }
  0x66   :  { %473 = vperm.xlu0 %3971, %v191_v15  }
  0x67   :  { %478 = vperm.xlu1 %3972, %v192_v14   ;;  %v4014_v14 = vld [vmem:[%s6047_s1 + $0x138] sm:$0xff]  }
  0x6a   :  { %543 = vperm.xlu0 %3971, %v205_v17   ;;  %3875 = vmatmul.mubr.msk.bf16.gmra.mxu0 %vm1253_vm0, %v4000_v18  ;;  %v4015_v17 = vld [vmem:[%s6047_s1 + $0x140] sm:$0xff]   ;;  %v224_v18 = vld [vmem:[%s6045_s2 + $0x238] sm:$0xff] }
  0x6b   :  { %548 = vperm.xlu1 %3972, %v206_v16   ;;  %3878 = vmatprep.mubr.msk.bf16.mxu0 %vm1253_vm0, %v4001_v19  ;;  %v223_v19 = vld [vmem:[%s6045_s2 + $0x230] sm:$0xff] }
  0x6e   :  { %463 = vperm.xlu0 %3971, %v189_v21  }
  0x6f   :  { %468 = vperm.xlu1 %3972, %v190_v20  }
  0x72   :  { %533 = vperm.xlu0 %3971, %v203_v23   ;;  %3879 = vmatmul.mubr.msk.bf16.gmra.mxu0 %vm1253_vm0, %v4002_v24  ;;  %v237_v23 = vld [vmem:[%s6045_s2 + $0x2a0] sm:$0xff]  ;;  %v4016_v24 = vld [vmem:[%s6047_s1 + $0x148] sm:$0xff]  }
  0x73   :  { %538 = vperm.xlu1 %3972, %v204_v22   ;;  %3882 = vmatprep.mubr.msk.bf16.mxu0 %vm1253_vm0, %v4003_v25  ;;  %v238_v22 = vld [vmem:[%s6045_s2 + $0x2a8] sm:$0xff] }
  0x76   :  { %453 = vperm.xlu0 %3971, %v187_v27   ;;  %v4017_v27 = vld [vmem:[%s6047_s1 + $0x150] sm:$0xff]  }
  0x77   :  { %458 = vperm.xlu1 %3972, %v188_v26  }
  0x7a   :  { %523 = vperm.xlu0 %3971, %v201_v29   ;;  %3883 = vmatmul.mubr.msk.bf16.gmra.mxu0 %vm1253_vm0, %v4004_v30  ;;  %v221_v29 = vld [vmem:[%s6045_s2 + $0x220] sm:$0xff] }
  0x7b   :  { %528 = vperm.xlu1 %3972, %v202_v28   ;;  %3886 = vmatprep.mubr.msk.bf16.mxu0 %vm1253_vm0, %v4005_v31  ;;  %v222_v28 = vld [vmem:[%s6045_s2 + $0x228] sm:$0xff] }
  0x7d   :  { %v4425_v34 = vpop.permute.xlu0 %433 }
  0x7e   :  { %v4427_v35 = vpop.permute.xlu1 %353  ;;  %443 = vperm.xlu0 %3971, %v185_v33   ;;  %v236_v33 = vld [vmem:[%s6045_s2 + $0x298] sm:$0xff] }
  0x7f   :  { %448 = vperm.xlu1 %3972, %v186_v32   ;;  %v4601_v32 = vld [vmem:[%s6048_s3 + $0x40] sm:$0xff] }
  0x80   :  { %6058 = vst [vmem:[#allocation2_spill] sm:$0xff] %v4601_v32 }
  0x81   :  { %v4439_v39 = vpop.permute.xlu0 %438 }
  0x82   :  { %v4441_v40 = vpop.permute.xlu1 %358  ;;  %753 = vperm.xlu0 %3971, %v247_v37   ;;  %3887 = vmatmul.mubr.msk.bf16.gmra.mxu0 %vm1253_vm0, %v4006_v38  ;;  %v4612_v37 = vld [vmem:[%s6048_s3 + $0x60] sm:$0xff]  ;;  %v4018_v38 = vld [vmem:[%s6047_s1 + $0x158] sm:$0xff]  }
  0x83   :  { %758 = vperm.xlu1 %3972, %v248_v36   ;;  %3890 = vmatprep.mubr.msk.bf16.mxu0 %vm1253_vm0, %v4007_v41  ;;  %v235_v36 = vld [vmem:[%s6045_s2 + $0x290] sm:$0xff]  ;;  %6059 = vst [vmem:[#allocation3_spill] sm:$0xff] %v4612_v37  ;;  %v269_v41 = vld [vmem:[%s6045_s2 + $0x3a0] sm:$0xff] }
  0x85   :  { %v4453_v44 = vpop.permute.xlu0 %423 }
  0x86   :  { %v4455_v45 = vpop.permute.xlu1 %428  ;;  %673 = vperm.xlu0 %3971, %v231_v43  }
  0x87   :  { %678 = vperm.xlu1 %3972, %v232_v42   ;;  %v3445_v42 = vcombine.high %v4601_v32, %v4612_v37 }
  0x89   :  { %v4469_v50 = vpop.permute.xlu0 %343  ;;  %2831 = vmatprep.mubr.bf16.mxu1 %v3445_v42  ;;  %v261_v42 = vld [vmem:[%s6045_s2 + $0x360] sm:$0xff] }
  0x8a   :  { %v4467_v49 = vpop.permute.xlu1 %348  ;;  %743 = vperm.xlu0 %3971, %v245_v47   ;;  %3891 = vmatmul.mubr.msk.bf16.gmra.mxu0 %vm1253_vm0, %v4008_v48  ;;  %v4019_v47 = vld [vmem:[%s6047_s1 + $0x160] sm:$0xff]   ;;  %v220_v48 = vld [vmem:[%s6045_s2 + $0x218] sm:$0xff] }
  0x8b   :  { %748 = vperm.xlu1 %3972, %v246_v46   ;;  %3894 = vmatprep.mubr.msk.bf16.mxu0 %vm1253_vm0, %v4009_v51  ;;  %v219_v51 = vld [vmem:[%s6045_s2 + $0x210] sm:$0xff] }
  0x8d   :  { %v4483_v55 = vpop.permute.xlu0 %413 }
  0x8e   :  { %v4481_v54 = vpop.permute.xlu1 %418  ;;  %663 = vperm.xlu0 %3971, %v229_v53  }
  0x8f   :  { %668 = vperm.xlu1 %3972, %v230_v52  }
  0x91   :  { %v4497_v60 = vpop.permute.xlu0 %333 }
  0x92   :  { %v4495_v59 = vpop.permute.xlu1 %338  ;;  %733 = vperm.xlu0 %3971, %v243_v57   ;;  %3895 = vmatmul.mubr.msk.bf16.gmra.mxu0 %vm1253_vm0, %v4010_v58  ;;  %v233_v57 = vld [vmem:[%s6045_s2 + $0x280] sm:$0xff]  ;;  %v4020_v58 = vld [vmem:[%s6047_s1 + $0x168] sm:$0xff]  }
  0x93   :  { %738 = vperm.xlu1 %3972, %v244_v56   ;;  %3898 = vmatprep.mubr.msk.bf16.mxu0 %vm1253_vm0, %v4011_v61  ;;  %v234_v56 = vld [vmem:[%s6045_s2 + $0x288] sm:$0xff] }
  0x95   :  { %v4511_v1 = vpop.permute.xlu0 %403 }
  0x96   :  { %v4509_v0 = vpop.permute.xlu1 %408  ;;  %653 = vperm.xlu0 %3971, %v227_v63   ;;  %v4021_v63 = vld [vmem:[%s6047_s1 + $0x170] sm:$0xff]  }
  0x97   :  { %658 = vperm.xlu1 %3972, %v228_v62  }
  0x99   :  { %v4525_v6 = vpop.permute.xlu0 %323 }
  0x9a   :  { %v4523_v5 = vpop.permute.xlu1 %328  ;;  %723 = vperm.xlu0 %3971, %v241_v3   ;;  %3899 = vmatmul.mubr.msk.bf16.gmra.mxu0 %vm1253_vm0, %v4012_v4  ;;  %v217_v3 = vld [vmem:[%s6045_s2 + $0x200] sm:$0xff] }
  0x9b   :  { %728 = vperm.xlu1 %3972, %v242_v2   ;;  %3902 = vmatprep.mubr.msk.bf16.mxu0 %vm1253_vm0, %v4013_v7  ;;  %v218_v2 = vld [vmem:[%s6045_s2 + $0x208] sm:$0xff] }
  0x9d   :  { %v4539_v11 = vpop.permute.xlu0 %393 }
  0x9e   :  { %v4537_v10 = vpop.permute.xlu1 %398  ;;  %643 = vperm.xlu0 %3971, %v225_v9   ;;  %v279_v9 = vld [vmem:[%s6045_s2 + $0x3f0] sm:$0xff] }
  0x9f   :  { %648 = vperm.xlu1 %3972, %v226_v8   ;;  %v280_v8 = vld [vmem:[%s6045_s2 + $0x3f8] sm:$0xff] }
  0xa1   :  { %v4553_v16 = vpop.permute.xlu0 %313 }
  0xa2   :  { %v4551_v15 = vpop.permute.xlu1 %318  ;;  %713 = vperm.xlu0 %3971, %v239_v13   ;;  %3903 = vmatmul.mubr.msk.bf16.gmra.mxu0 %vm1253_vm0, %v4014_v14 }
  0xa3   :  { %718 = vperm.xlu1 %3972, %v240_v12   ;;  %3906 = vmatprep.mubr.msk.bf16.mxu0 %vm1253_vm0, %v4015_v17  ;;  %v4022_v12 = vld [vmem:[%s6047_s1 + $0x178] sm:$0xff]   ;;  %v4023_v17 = vld [vmem:[%s6047_s1 + $0x180] sm:$0xff]  }
  0xa5   :  { %v4567_v21 = vpop.permute.xlu0 %383 }
  0xa6   :  { %v4565_v20 = vpop.permute.xlu1 %388  ;;  %633 = vperm.xlu0 %3971, %v223_v19   ;;  %v263_v19 = vld [vmem:[%s6045_s2 + $0x370] sm:$0xff] }
  0xa7   :  { %638 = vperm.xlu1 %3972, %v224_v18   ;;  %v264_v18 = vld [vmem:[%s6045_s2 + $0x378] sm:$0xff] }
  0xa9   :  { %v4581_v26 = vpop.permute.xlu0 %303 }
  0xaa   :  { %v4579_v25 = vpop.permute.xlu1 %308  ;;  %703 = vperm.xlu0 %3971, %v237_v23   ;;  %3907 = vmatmul.mubr.msk.bf16.gmra.mxu0 %vm1253_vm0, %v4016_v24  ;;  %v278_v24 = vld [vmem:[%s6045_s2 + $0x3e8] sm:$0xff] }
  0xab   :  { %708 = vperm.xlu1 %3972, %v238_v22   ;;  %3910 = vmatprep.mubr.msk.bf16.mxu0 %vm1253_vm0, %v4017_v27  ;;  %v277_v27 = vld [vmem:[%s6045_s2 + $0x3e0] sm:$0xff] }
  0xad   :  { %v4595_v31 = vpop.permute.xlu0 %373 }
  0xae   :  { %v4593_v30 = vpop.permute.xlu1 %378  ;;  %623 = vperm.xlu0 %3971, %v221_v29  }
  0xaf   :  { %628 = vperm.xlu1 %3972, %v222_v28   ;;  %v4024_v28 = vld [vmem:[%s6047_s1 + $0x188] sm:$0xff]  }
  0xb1   :  { %v294_v46 = vpop.permute.xlu0 %293 }
  0xb2   :  { %v4621_v43 = vpop.permute.xlu1 %298  ;;  %693 = vperm.xlu0 %3971, %v235_v36   ;;  %3911 = vmatmul.mubr.msk.bf16.gmra.mxu0 %vm1253_vm0, %v4018_v38  ;;  %v4025_v36 = vld [vmem:[%s6047_s1 + $0x190] sm:$0xff]   ;;  %v262_v38 = vld [vmem:[%s6045_s2 + $0x368] sm:$0xff] }
  0xb3   :  { %698 = vperm.xlu1 %3972, %v236_v33   ;;  %3914 = vmatprep.mubr.msk.bf16.mxu0 %vm1253_vm0, %v4019_v47 }
  0xb5   :  { %v4635_v53 = vpop.permute.xlu0 %363 }
  0xb6   :  { %v4633_v52 = vpop.permute.xlu1 %368  ;;  %613 = vperm.xlu0 %3971, %v219_v51  }
  0xb7   :  { %618 = vperm.xlu1 %3972, %v220_v48  }
  0xb9   :  { %v284_v62 = vpop.permute.xlu0 %283 }
  0xba   :  { %v4647_v61 = vpop.permute.xlu1 %288  ;;  %683 = vperm.xlu0 %3971, %v233_v57   ;;  %3915 = vmatmul.mubr.msk.bf16.gmra.mxu0 %vm1253_vm0, %v4020_v58 }
  0xbb   :  { %688 = vperm.xlu1 %3972, %v234_v56   ;;  %3918 = vmatprep.mubr.msk.bf16.mxu0 %vm1253_vm0, %v4021_v63  ;;  %v276_v63 = vld [vmem:[%s6045_s2 + $0x3d8] sm:$0xff] }
  0xbd   :  { %v4661_v7 = vpop.permute.xlu0 %593 }
  0xbe   :  { %v4659_v4 = vpop.permute.xlu1 %598  ;;  %6061 = vst [vmem:[#allocation5_spill] sm:$0xff] %v4661_v7  ;;  %603 = vperm.xlu0 %3971, %v217_v3  }
  0xbf   :  { %6060 = vst [vmem:[#allocation4_spill] sm:$0xff] %v4659_v4  ;;  %608 = vperm.xlu1 %3972, %v218_v2   ;;  %v275_v2 = vld [vmem:[%s6045_s2 + $0x3d0] sm:$0xff] }
  0xc1   :  { %v4675_v14 = vpop.permute.xlu0 %513 }
  0xc2   :  { %v4673_v13 = vpop.permute.xlu1 %518  ;;  %6063 = vst [vmem:[#allocation7_spill] sm:$0xff] %v4675_v14  ;;  %913 = vperm.xlu0 %3971, %v279_v9   ;;  %3919 = vmatmul.mubr.msk.bf16.gmra.mxu0 %vm1253_vm0, %v4022_v12  ;;  %v249_v14 = vld [vmem:[%s6045_s2 + $0x300] sm:$0xff] }
  0xc3   :  { %6062 = vst [vmem:[#allocation6_spill] sm:$0xff] %v4673_v13  ;;  %918 = vperm.xlu1 %3972, %v280_v8   ;;  %3922 = vmatprep.mubr.msk.bf16.mxu0 %vm1253_vm0, %v4023_v17 }
  0xc5   :  { %v4689_v23 = vpop.permute.xlu0 %583 }
  0xc6   :  { %v4687_v22 = vpop.permute.xlu1 %588  ;;  %6065 = vst [vmem:[#allocation9_spill] sm:$0xff] %v4689_v23  ;;  %833 = vperm.xlu0 %3971, %v263_v19   ;;  %v265_v23 = vld [vmem:[%s6045_s2 + $0x380] sm:$0xff] }
  0xc7   :  { %6064 = vst [vmem:[#allocation8_spill] sm:$0xff] %v4687_v22  ;;  %838 = vperm.xlu1 %3972, %v264_v18  }
  0xc9   :  { %v4703_v33 = vpop.permute.xlu0 %503 }
  0xca   :  { %v4701_v29 = vpop.permute.xlu1 %508  ;;  %6067 = vst [vmem:[#allocation11_spill] sm:$0xff] %v4703_v33  ;;  %903 = vperm.xlu0 %3971, %v277_v27   ;;  %v3828_v47 = vpop.f32.mrf.mxu0  ;;  %3923 = vmatmul.mubr.msk.bf16.gmra.mxu0 %vm1253_vm0, %v4024_v28  ;;  %v260_v28 = vld [vmem:[%s6045_s2 + $0x358] sm:$0xff] }
  0xcb   :  { %6066 = vst [vmem:[#allocation10_spill] sm:$0xff] %v4701_v29  ;;  %908 = vperm.xlu1 %3972, %v278_v24   ;;  %v1489_v48 = vadd.f32 %v3828_v47, %v294_v46  ;;  %3926 = vmatprep.mubr.msk.bf16.mxu0 %vm1253_vm0, %v4025_v36  ;;  %v4026_v46 = vld [vmem:[%s6047_s1 + $0x198] sm:$0xff]  }
  0xcc   :  { %v1480_v57 = vpop.f32.mrf.mxu0 }
  0xcd   :  { %v4717_v56 = vpop.permute.xlu0 %573  ;;  %v1481_v58 = vadd.f32 %v1480_v57, %v284_v62  ;;  %v1993_v8 = vmax.f32 %v1489_v48, 0.0  ;;  %v4027_v62 = vld [vmem:[%s6047_s1 + $0x1a0] sm:$0xff]  }
  0xce   :  { %v4715_v51 = vpop.permute.xlu1 %578  ;;  %6069 = vst [vmem:[#allocation13_spill] sm:$0xff] %v4717_v56  ;;  %823 = vperm.xlu0 %3971, %v261_v42   ;;  %v3829_v3 = vpop.f32.mrf.mxu0 }
  0xcf   :  { %6068 = vst [vmem:[#allocation12_spill] sm:$0xff] %v4715_v51  ;;  %828 = vperm.xlu1 %3972, %v262_v38   ;;  %v1492_v9 = vadd.f32 %v3829_v3, %v4621_v43  ;;  %v1991_v19 = vmax.f32 %v1481_v58, 0.0  ;;  %v259_v43 = vld [vmem:[%s6045_s2 + $0x350] sm:$0xff]  ;;  %v2121_v38 = vmin.f32 %v1993_v8, 6.0  ;;  %v274_v8 = vld [vmem:[%s6045_s2 + $0x3c8] sm:$0xff] }
  0xd0   :  { %v1483_v18 = vpop.f32.mrf.mxu0  ;;  %v251_v51 = vld [vmem:[%s6045_s2 + $0x310] sm:$0xff] }
  0xd1   :  { %v4732_v17 = vpop.permute.xlu0 %493  ;;  %v1994_v24 = vmax.f32 %v1492_v9, 0.0  ;;  %v1484_v27 = vadd.f32 %v1483_v18, %v4647_v61 }
  0xd2   :  { %v4730_v12 = vpop.permute.xlu1 %498  ;;  %6071 = vst [vmem:[#allocation15_spill] sm:$0xff] %v4732_v17  ;;  %893 = vperm.xlu0 %3971, %v275_v2   ;;  %v3832_v36 = vpop.f32.mrf.mxu0  ;;  %3927 = vmatmul.mubr.msk.bf16.gmra.mxu0 %vm1253_vm0, %v4026_v46  ;;  %v4946_v17 = vld [vmem:[%s6048_s3 + $0x20] sm:$0xff] }
  0xd3   :  { %6070 = vst [vmem:[#allocation14_spill] sm:$0xff] %v4730_v12  ;;  %898 = vperm.xlu1 %3972, %v276_v63   ;;  %v2122_v42 = vmin.f32 %v1994_v24, 6.0  ;;  %v1992_v47 = vmax.f32 %v1484_v27, 0.0  ;;  %v1505_v48 = vadd.f32 %v3832_v36, %v4553_v16  ;;  %3930 = vmatprep.mubr.msk.bf16.mxu0 %vm1253_vm0, %v4027_v62  ;;  %v2119_v63 = vmin.f32 %v1991_v19, 6.0  ;;  %v273_v16 = vld [vmem:[%s6045_s2 + $0x3c0] sm:$0xff]  ;;  %v4028_v62 = vld [vmem:[%s6047_s1 + $0x1a8] sm:$0xff]  }
  0xd4   :  { %v1496_v61 = vpop.f32.mrf.mxu0  ;;  %6090 = vst [vmem:[#allocation34_spill] sm:$0xff] %v4946_v17 }
  0xd5   :  { %v4748_v58 = vpop.permute.xlu0 %563  ;;  %v4751_v2 = vpack.c.bf16 %v2122_v42, %v2121_v38  ;;  %v2120_v3 = vmin.f32 %v1992_v47, 6.0  ;;  %v1497_v46 = vadd.f32 %v1496_v61, %v4581_v26  ;;  %v1997_v19 = vmax.f32 %v1505_v48, 0.0  ;;  %v258_v47 = vld [vmem:[%s6045_s2 + $0x348] sm:$0xff] }
  0xd6   :  { %v4746_v57 = vpop.permute.xlu1 %568  ;;  %6073 = vst [vmem:[#allocation17_spill] sm:$0xff] %v4748_v58  ;;  %813 = vperm.xlu0 %3971, %v259_v43   ;;  %v3833_v9 = vpop.f32.mrf.mxu0 }
  0xd7   :  { %6072 = vst [vmem:[#allocation16_spill] sm:$0xff] %v4746_v57  ;;  %818 = vperm.xlu1 %3972, %v260_v28   ;;  %6074 = vst [vmem:[#allocation18_spill] sm:$0xff] %v4751_v2  ;;  %v4763_v18 = vpack.c.bf16 %v2120_v3, %v2119_v63  ;;  %v1508_v24 = vadd.f32 %v3833_v9, %v4551_v15  ;;  %v4029_v28 = vld [vmem:[%s6047_s1 + $0x1b0] sm:$0xff]   ;;  %v1995_v36 = vmax.f32 %v1497_v46, 0.0  ;;  %v257_v15 = vld [vmem:[%s6045_s2 + $0x340] sm:$0xff]  ;;  %v2125_v61 = vmin.f32 %v1997_v19, 6.0 }
  0xd8   :  { %v1499_v43 = vpop.f32.mrf.mxu0  ;;  %v271_v19 = vld [vmem:[%s6045_s2 + $0x3b0] sm:$0xff]  ;;  %v2378_v2 = vld [vmem:[%s6049_s4 + $0x18] sm:$0xff] }
  0xd9   :  { %6075 = vst [vmem:[#allocation19_spill] sm:$0xff] %v4763_v18  ;;  %v4768_v26 = vpop.permute.xlu0 %483  ;;  %v1998_v38 = vmax.f32 %v1508_v24, 0.0  ;;  %v1500_v42 = vadd.f32 %v1499_v43, %v4579_v25 }
  0xda   :  { %v4766_v27 = vpop.permute.xlu1 %488  ;;  %6077 = vst [vmem:[#allocation21_spill] sm:$0xff] %v4768_v26  ;;  %883 = vperm.xlu0 %3971, %v273_v16   ;;  %v4780_v48 = vpop.f32.mrf.mxu0  ;;  %3931 = vmatmul.mubr.msk.bf16.gmra.mxu0 %vm1253_vm0, %v4028_v62  ;;  %v2123_v16 = vmin.f32 %v1995_v36, 6.0  ;;  %v272_v62 = vld [vmem:[%s6045_s2 + $0x3b8] sm:$0xff] }
  0xdb   :  { %6076 = vst [vmem:[#allocation20_spill] sm:$0xff] %v4766_v27  ;;  %888 = vperm.xlu1 %3972, %v274_v8   ;;  %v2126_v63 = vmin.f32 %v1998_v38, 6.0  ;;  %v1996_v3 = vmax.f32 %v1500_v42, 0.0  ;;  %3934 = vmatprep.mubr.msk.bf16.mxu0 %vm1253_vm0, %v4029_v28  ;;  %v4030_v28 = vld [vmem:[%s6047_s1 + $0x1b8] sm:$0xff]   ;;  %v267_v27 = vld [vmem:[%s6045_s2 + $0x390] sm:$0xff] }
  0xdc   :  { %v4788_v25 = vpop.f32.mrf.mxu0 }
  0xdd   :  { %v4785_v46 = vpop.permute.xlu0 %553  ;;  %v4790_v9 = vpack.c.bf16 %v2126_v63, %v2125_v61  ;;  %v2124_v24 = vmin.f32 %v1996_v3, 6.0  ;;  %v256_v61 = vld [vmem:[%s6045_s2 + $0x338] sm:$0xff]  ;;  %v255_v63 = vld [vmem:[%s6045_s2 + $0x330] sm:$0xff] }
  0xde   :  { %v4783_v8 = vpop.permute.xlu1 %558  ;;  %6079 = vst [vmem:[#allocation23_spill] sm:$0xff] %v4785_v46  ;;  %803 = vperm.xlu0 %3971, %v257_v15   ;;  %v4798_v43 = vpop.f32.mrf.mxu0 }
  0xdf   :  { %6078 = vst [vmem:[#allocation22_spill] sm:$0xff] %v4783_v8  ;;  %808 = vperm.xlu1 %3972, %v258_v47   ;;  %v4803_v38 = vpack.c.bf16 %v2124_v24, %v2123_v16  ;;  %v4031_v47 = vld [vmem:[%s6047_s1 + $0x1c0] sm:$0xff]  }
  0xe0   :  { %v4812_v15 = vpop.f32.mrf.mxu0  ;;  %v253_v8 = vld [vmem:[%s6045_s2 + $0x320] sm:$0xff] }
  0xe1   :  { %6080 = vst [vmem:[#allocation24_spill] sm:$0xff] %v4803_v38  ;;  %v4807_v42 = vpop.permute.xlu0 %473  ;;  %v2377_v38 = vld [vmem:[%s6049_s4 + $0x10] sm:$0xff] }
  0xe2   :  { %v4805_v36 = vpop.permute.xlu1 %478  ;;  %873 = vperm.xlu0 %3971, %v271_v19   ;;  %v4820_v3 = vpop.f32.mrf.mxu0  ;;  %3935 = vmatmul.mubr.msk.bf16.gmra.mxu0 %vm1253_vm0, %v4030_v28  ;;  %v270_v19 = vld [vmem:[%s6045_s2 + $0x3a8] sm:$0xff] }
  0xe3   :  { %878 = vperm.xlu1 %3972, %v272_v62   ;;  %3938 = vmatprep.mubr.msk.bf16.mxu0 %vm1253_vm0, %v4031_v47  ;;  %v4032_v28 = vld [vmem:[%s6047_s1 + $0x1c8] sm:$0xff]  }
  0xe4   :  { %v4828_v62 = vpop.f32.mrf.mxu0 }
  0xe5   :  { %v4825_v24 = vpop.permute.xlu0 %543 }
  0xe6   :  { %v4823_v16 = vpop.permute.xlu1 %548  ;;  %6082 = vst [vmem:[#allocation26_spill] sm:$0xff] %v4825_v24  ;;  %793 = vperm.xlu0 %3971, %v255_v63   ;;  %v4836_v46 = vpop.f32.mrf.mxu0 }
  0xe7   :  { %6081 = vst [vmem:[#allocation25_spill] sm:$0xff] %v4823_v16  ;;  %798 = vperm.xlu1 %3972, %v256_v61   ;;  %v4033_v61 = vld [vmem:[%s6047_s1 + $0x1d0] sm:$0xff]   ;;  %v254_v16 = vld [vmem:[%s6045_s2 + $0x328] sm:$0xff] }
  0xe8   :  { %v4848_v63 = vpop.f32.mrf.mxu0 }
  0xe9   :  { %v4843_v47 = vpop.permute.xlu0 %463 }
  0xea   :  { %v4841_v24 = vpop.permute.xlu1 %468  ;;  %863 = vperm.xlu0 %3971, %v269_v41   ;;  %v4856_v58 = vpop.f32.mrf.mxu0  ;;  %3939 = vmatmul.mubr.msk.bf16.gmra.mxu0 %vm1253_vm0, %v4032_v28  ;;  %v4034_v28 = vld [vmem:[%s6047_s1 + $0x1d8] sm:$0xff]  }
  0xeb   :  { %868 = vperm.xlu1 %3972, %v270_v19   ;;  %3942 = vmatprep.mubr.msk.bf16.mxu0 %vm1253_vm0, %v4033_v61  ;;  %v268_v19 = vld [vmem:[%s6045_s2 + $0x398] sm:$0xff] }
  0xec   :  { %v4864_v41 = vpop.f32.mrf.mxu0 }
  0xed   :  { %v4861_v56 = vpop.permute.xlu0 %533 }
  0xee   :  { %v4859_v57 = vpop.permute.xlu1 %538  ;;  %6084 = vst [vmem:[#allocation28_spill] sm:$0xff] %v4861_v56  ;;  %783 = vperm.xlu0 %3971, %v253_v8   ;;  %v4872_v22 = vpop.f32.mrf.mxu0  ;;  %v4035_v8 = vld [vmem:[%s6047_s1 + $0x1e0] sm:$0xff]  }
  0xef   :  { %6083 = vst [vmem:[#allocation27_spill] sm:$0xff] %v4859_v57  ;;  %788 = vperm.xlu1 %3972, %v254_v16   ;;  %v252_v57 = vld [vmem:[%s6045_s2 + $0x318] sm:$0xff] }
  0xf0   :  { %v4884_v61 = vpop.f32.mrf.mxu0 }
  0xf1   :  { %v4879_v16 = vpop.permute.xlu0 %453 }
  0xf2   :  { %v4877_v56 = vpop.permute.xlu1 %458  ;;  %853 = vperm.xlu0 %3971, %v267_v27   ;;  %v4892_v33 = vpop.f32.mrf.mxu0  ;;  %3943 = vmatmul.mubr.msk.bf16.gmra.mxu0 %vm1253_vm0, %v4034_v28  ;;  %v4036_v28 = vld [vmem:[%s6047_s1 + $0x1e8] sm:$0xff]  }
  0xf3   :  { %858 = vperm.xlu1 %3972, %v268_v19   ;;  %3946 = vmatprep.mubr.msk.bf16.mxu0 %vm1253_vm0, %v4035_v8  ;;  %v266_v19 = vld [vmem:[%s6045_s2 + $0x388] sm:$0xff] }
  0xf4   :  { %v4900_v27 = vpop.f32.mrf.mxu0 }
  0xf5   :  { %v4897_v29 = vpop.permute.xlu0 %523 }
  0xf6   :  { %v4895_v4 = vpop.permute.xlu1 %528  ;;  %6086 = vst [vmem:[#allocation30_spill] sm:$0xff] %v4897_v29  ;;  %773 = vperm.xlu0 %3971, %v251_v51   ;;  %v4908_v12 = vpop.f32.mrf.mxu0  ;;  %v4037_v51 = vld [vmem:[%s6047_s1 + $0x1f0] sm:$0xff]  }
  0xf7   :  { %6085 = vst [vmem:[#allocation29_spill] sm:$0xff] %v4895_v4  ;;  %778 = vperm.xlu1 %3972, %v252_v57   ;;  %v250_v4 = vld [vmem:[%s6045_s2 + $0x308] sm:$0xff] }
  0xf8   :  { %v4920_v8 = vpop.f32.mrf.mxu0 }
  0xf9   :  { %v4915_v57 = vpop.permute.xlu0 %443 }
  0xfa   :  { %v4913_v29 = vpop.permute.xlu1 %448  ;;  %843 = vperm.xlu0 %3971, %v265_v23   ;;  %v4928_v26 = vpop.f32.mrf.mxu0  ;;  %3947 = vmatmul.mubr.msk.bf16.gmra.mxu0 %vm1253_vm0, %v4036_v28  ;;  %v2376_v28 = vld [vmem:[%s6049_s4 + $0x8] sm:$0xff] }
  0xfb   :  { %848 = vperm.xlu1 %3972, %v266_v19   ;;  %3950 = vmatprep.mubr.msk.bf16.mxu0 %vm1253_vm0, %v4037_v51  ;;  %v4941_v19 = vld [vmem:[%s6048_s3] sm:$0xff]  ;;  %v4038_v51 = vld [vmem:[%s6047_s1 + $0x1f8] sm:$0xff]  }
  0xfc   :  { %v4936_v23 = vpop.f32.mrf.mxu0  ;;  %6089 = vst [vmem:[#allocation33_spill] sm:$0xff] %v4941_v19  ;;  %v3437_v32 = vcombine.high %v4941_v19, %v4946_v17  ;;  %v4981_v19 = vadd.f32 %v4788_v25, %v4525_v6  ;;  %v1537_v17 = vadd.f32 %v4820_v3, %v4427_v35  ;;  %v2379_v6 = vld [vmem:[%s6049_s4 + $0x20] sm:$0xff]  ;;  %v1532_v35 = vadd.f32 %v4848_v63, %v4467_v49 }
  0xfd   :  { %v4933_v13 = vpop.permute.xlu0 %753 }
  0xfe   :  { %v4931_v7 = vpop.permute.xlu1 %758  ;;  %6088 = vst [vmem:[#allocation32_spill] sm:$0xff] %v4933_v13  ;;  %763 = vperm.xlu0 %3971, %v249_v14   ;;  %v3853_v14 = vpop.f32.mrf.mxu0 }
  0xff   :  { %6087 = vst [vmem:[#allocation31_spill] sm:$0xff] %v4931_v7  ;;  %768 = vperm.xlu1 %3972, %v250_v4   ;;  %v2375_v4 = vld [vmem:[%s6049_s4] sm:$0xff]  ;;  %v1521_v7 = vadd.f32 %v4780_v48, %v4497_v60  ;;  %v1540_v60 = vadd.f32 %v4836_v46, %v4441_v40  ;;  %v2380_v46 = vld [vmem:[%s6049_s4 + $0x28] sm:$0xff] }
 0x100   :  { %v1579_v18 = vpop.f32.mrf.mxu0 }
 0x101   :  { %v4961_v37 = vpop.permute.xlu0 %673 }
 0x102   :  { %v4959_v13 = vpop.permute.xlu1 %678  ;;  %6092 = vst [vmem:[#allocation36_spill] sm:$0xff] %v4961_v37  ;;  %2393 = vperm.xlu0 %3971, %v2375_v4   ;;  %v3856_v48 = vpop.f32.mrf.mxu0  ;;  %3951 = vmatmul.mubr.msk.bf16.gmra.mxu0 %vm1253_vm0, %v4038_v51  ;;  %v2001_v37 = vmax.f32 %v1521_v7, 0.0  ;;  %v1524_v7 = vadd.f32 %v4798_v43, %v4495_v59  ;;  %v2005_v51 = vmax.f32 %v1537_v17, 0.0  ;;  %v2381_v17 = vld [vmem:[%s6049_s4 + $0x30] sm:$0xff] }
 0x103   :  { %6091 = vst [vmem:[#allocation35_spill] sm:$0xff] %v4959_v13  ;;  %2398 = vperm.xlu1 %3972, %v2376_v28   ;;  %v1601_v13 = vadd.f32 %v3856_v48, %v4425_v34  ;;  %2823 = vmatprep.mubr.bf16.mxu0 %v3437_v32  ;;  %v2006_v32 = vmax.f32 %v1540_v60, 0.0  ;;  %v1529_v48 = vadd.f32 %v4828_v62, %v4469_v50  ;;  %v2004_v62 = vmax.f32 %v1532_v35, 0.0 }
 0x104   :  { %v1592_v40 = vpop.f32.mrf.mxu0  ;;  %v4996_v25 = vmin.f32 %v2001_v37, 6.0  ;;  %v1588_v60 = vadd.f32 %v3853_v14, %v4481_v54  ;;  %v2002_v37 = vmax.f32 %v1524_v7, 0.0  ;;  %v5016_v50 = vadd.f32 %v4812_v15, %v4523_v5 }
 0x105   :  { %v4977_v4 = vpop.permute.xlu0 %743  ;;  %v1593_v34 = vadd.f32 %v1592_v40, %v4453_v44  ;;  %v2382_v40 = vld [vmem:[%s6049_s4 + $0x38] sm:$0xff]  ;;  %v2134_v54 = vmin.f32 %v2006_v32, 6.0  ;;  %v1585_v14 = vadd.f32 %v4928_v26, %v4483_v55  ;;  %v2003_v3 = vmax.f32 %v1529_v48, 0.0 }
 0x106   :  { %v4975_v28 = vpop.permute.xlu1 %748  ;;  %6094 = vst [vmem:[#allocation38_spill] sm:$0xff] %v4977_v4  ;;  %2403 = vperm.xlu0 %3971, %v2377_v38   ;;  %v2021_v38 = vmax.f32 %v1601_v13, 0.0  ;;  %v1580_v5 = vadd.f32 %v1579_v18, %v4509_v0  ;;  %v2132_v48 = vmin.f32 %v2004_v62, 6.0  ;;  %v1577_v0 = vadd.f32 %v4936_v23, %v4511_v1 }
 0x107   :  { %6093 = vst [vmem:[#allocation37_spill] sm:$0xff] %v4975_v28  ;;  %2408 = vperm.xlu1 %3972, %v2378_v2   ;;  %v3857_v2 = vpop.f32.mrf.mxu0  ;;  %v2019_v63 = vmax.f32 %v1593_v34, 0.0  ;;  %v2018_v28 = vmax.f32 %v1588_v60, 0.0  ;;  %v2017_v60 = vmax.f32 %v1585_v14, 0.0  ;;  %v2000_v23 = vmax.f32 %v5016_v50, 0.0 }
 0x108   :  { %v1604_v59 = vadd.f32 %v3857_v2, %v4439_v39  ;;  %v2149_v34 = vmin.f32 %v2021_v38, 6.0  ;;  %v2383_v38 = vld [vmem:[%s6049_s4 + $0x40] sm:$0xff]  ;;  %v2016_v14 = vmax.f32 %v1580_v5, 0.0  ;;  %v2015_v50 = vmax.f32 %v1577_v0, 0.0 }
 0x109   :  { %v5001_v44 = vpop.permute.xlu0 %663  ;;  %v1595_v49 = vpop.f32.mrf.mxu0  ;;  %v2147_v32 = vmin.f32 %v2019_v63, 6.0  ;;  %v2146_v62 = vmin.f32 %v2018_v28, 6.0  ;;  %v1569_v28 = vadd.f32 %v4892_v33, %v4539_v11  ;;  %v1564_v11 = vadd.f32 %v4920_v8, %v4565_v20  ;;  %v2388_v20 = vld [vmem:[%s6049_s4 + $0x68] sm:$0xff]  ;;  %v2387_v8 = vld [vmem:[%s6049_s4 + $0x60] sm:$0xff] }
 0x10a   :  { %v4999_v43 = vpop.permute.xlu1 %668  ;;  %6096 = vst [vmem:[#allocation40_spill] sm:$0xff] %v5001_v44  ;;  %2413 = vperm.xlu0 %3971, %v2379_v6   ;;  %v2022_v13 = vmax.f32 %v1604_v59, 0.0  ;;  %v1596_v39 = vadd.f32 %v1595_v49, %v4455_v45  ;;  %v2133_v49 = vmin.f32 %v2005_v51, 6.0  ;;  %v2130_v51 = vmin.f32 %v2002_v37, 6.0  ;;  %v6139_v44 = vld [vmem:[#allocation12_spill] sm:$0xff] }
 0x10b   :  { %6095 = vst [vmem:[#allocation39_spill] sm:$0xff] %v4999_v43  ;;  %2418 = vperm.xlu1 %3972, %v2380_v46   ;;  %v3860_v7 = vpop.f32.mrf.mxu0  ;;  %v1572_v37 = vadd.f32 %v4908_v12, %v4537_v10  ;;  %v2385_v10 = vld [vmem:[%s6049_s4 + $0x50] sm:$0xff]  ;;  %v2013_v0 = vmax.f32 %v1569_v28, 0.0 }
 0x10c   :  { %v2150_v45 = vmin.f32 %v2022_v13, 6.0  ;;  %v2020_v46 = vmax.f32 %v1596_v39, 0.0  ;;  %v1617_v6 = vadd.f32 %v3860_v7, %v4879_v16  ;;  %v2384_v16 = vld [vmem:[%s6049_s4 + $0x48] sm:$0xff]  ;;  %v2318_v63 = vpack.c.bf16 %v2134_v54, %v2133_v49 }
 0x10d   :  { %v5023_v59 = vpop.permute.xlu0 %733  ;;  %v1608_v15 = vpop.f32.mrf.mxu0  ;;  %v2131_v7 = vmin.f32 %v2003_v3, 6.0  ;;  %v2386_v3 = vld [vmem:[%s6049_s4 + $0x58] sm:$0xff] }
 0x10e   :  { %v5021_v2 = vpop.permute.xlu1 %738  ;;  %6098 = vst [vmem:[#allocation42_spill] sm:$0xff] %v5023_v59  ;;  %2423 = vperm.xlu0 %3971, %v2381_v17   ;;  %v2326_v55 = vpack.c.bf16 %v2150_v45, %v2149_v34  ;;  %v2148_v26 = vmin.f32 %v2020_v46, 6.0  ;;  %v1609_v35 = vadd.f32 %v1608_v15, %v4915_v57  ;;  %v2025_v39 = vmax.f32 %v1617_v6, 0.0 }
 0x10f   :  { %6097 = vst [vmem:[#allocation41_spill] sm:$0xff] %v5021_v2  ;;  %2428 = vperm.xlu1 %3972, %v2382_v40   ;;  %v3861_v18 = vpop.f32.mrf.mxu0  ;;  %v2317_v12 = vpack.c.bf16 %v2132_v48, %v2131_v7  ;;  %v2145_v45 = vmin.f32 %v2017_v60, 6.0  ;;  %v2316_v60 = vpack.c.bf16 %v2130_v51, %v4996_v25  ;;  %v1556_v25 = vadd.f32 %v4872_v22, %v4593_v30  ;;  %v2389_v30 = vld [vmem:[%s6049_s4 + $0x70] sm:$0xff] }
 0x110   :  { %v2325_v13 = vpack.c.bf16 %v2148_v26, %v2147_v32  ;;  %v1620_v57 = vadd.f32 %v3861_v18, %v4877_v56  ;;  %3566 = vmatprep.subr.bf16.mxu0 %v2326_v55  ;;  %3954 = vmatprep.subr.bf16.mxu1 %v2326_v55  ;;  %v2023_v54 = vmax.f32 %v1609_v35, 0.0  ;;  %v2014_v55 = vmax.f32 %v1572_v37, 0.0 }
 0x111   :  { %v5038_v17 = vpop.permute.xlu0 %653  ;;  %v1611_v1 = vpop.f32.mrf.mxu0  ;;  %3567 = vmatpush3.bf16.msra.mxu0 %v2318_v63  ;;  %3962 = vmatpush3.bf16.msra.mxu1 %v2318_v63  ;;  %v2324_v33 = vpack.c.bf16 %v2146_v62, %v2145_v45  ;;  %v2144_v26 = vmin.f32 %v2016_v14, 6.0  ;;  %v1561_v18 = vadd.f32 %v4900_v27, %v4567_v21  ;;  %v2143_v63 = vmin.f32 %v2015_v50, 6.0 }
 0x112   :  { %v5036_v40 = vpop.permute.xlu1 %658  ;;  %6100 = vst [vmem:[#allocation44_spill] sm:$0xff] %v5038_v17  ;;  %2433 = vperm.xlu0 %3971, %v2383_v38   ;;  %v2026_v34 = vmax.f32 %v1620_v57, 0.0  ;;  %v1612_v56 = vadd.f32 %v1611_v1, %v4913_v29  ;;  %3568 = vmatprep.subr.bf16.mxu0 %v2325_v13  ;;  %v5052_v29 = vmin.f32 %v2025_v39, 6.0  ;;  %v2142_v51 = vmin.f32 %v2014_v55, 6.0 }
 0x113   :  { %6099 = vst [vmem:[#allocation43_spill] sm:$0xff] %v5036_v40  ;;  %2438 = vperm.xlu1 %3972, %v2384_v16   ;;  %3955 = vmatprep.subr.bf16.mxu1 %v2325_v13  ;;  %v3864_v46 = vpop.f32.mrf.mxu0  ;;  %v5063_v16 = vmin.f32 %v2023_v54, 6.0  ;;  %v2128_v13 = vmin.f32 %v2000_v23, 6.0  ;;  %v2012_v21 = vmax.f32 %v1564_v11, 0.0  ;;  %v2323_v27 = vpack.c.bf16 %v2144_v26, %v2143_v63  ;;  %v6142_v40 = vld [vmem:[#allocation20_spill] sm:$0xff] }
 0x114   :  { %v5054_v6 = vmin.f32 %v2026_v34, 6.0  ;;  %v2024_v49 = vmax.f32 %v1612_v56, 0.0  ;;  %v1633_v5 = vadd.f32 %v3864_v46, %v4807_v42  ;;  %v6105_v1 = vmax.f32 %v4981_v19, 0.0  ;;  %v2390_v56 = vld [vmem:[%s6049_s4 + $0x78] sm:$0xff] }
 0x115   :  { %v5059_v32 = vpop.permute.xlu0 %723  ;;  %v1624_v35 = vpop.f32.mrf.mxu0  ;;  %3569 = vmatpush3.bf16.msra.mxu0 %v2317_v12  ;;  %3963 = vmatpush3.bf16.msra.mxu1 %v2317_v12  ;;  %v1553_v22 = vadd.f32 %v4856_v58, %v4595_v31  ;;  %v2011_v19 = vmax.f32 %v1561_v18, 0.0  ;;  %v1548_v31 = vadd.f32 %v4884_v61, %v4633_v52 }
 0x116   :  { %v5057_v15 = vpop.permute.xlu1 %728  ;;  %6102 = vst [vmem:[#allocation46_spill] sm:$0xff] %v5059_v32  ;;  %2443 = vperm.xlu0 %3971, %v2385_v10   ;;  %v5067_v48 = vmin.f32 %v2024_v49, 6.0  ;;  %v1625_v42 = vadd.f32 %v1624_v35, %v4843_v47  ;;  %3570 = vmatprep.subr.bf16.mxu0 %v2324_v33  ;;  %v2029_v57 = vmax.f32 %v1633_v5, 0.0  ;;  %v2127_v23 = vmin.f32 %v6105_v1, 6.0 }
 0x117   :  { %6101 = vst [vmem:[#allocation45_spill] sm:$0xff] %v5057_v15  ;;  %2448 = vperm.xlu1 %3972, %v2386_v3   ;;  %3956 = vmatprep.subr.bf16.mxu1 %v2324_v33  ;;  %v3865_v47 = vpop.f32.mrf.mxu0  ;;  %v2141_v3 = vmin.f32 %v2013_v0, 6.0  ;;  %v2010_v49 = vmax.f32 %v1556_v25, 0.0  ;;  %v2140_v5 = vmin.f32 %v2012_v21, 6.0  ;;  %v2009_v35 = vmax.f32 %v1553_v22, 0.0  ;;  %v2267_v22 = vld [vmem:[%s6048_s3 + $0xa0] sm:$0xff] }
 0x118   :  { %v1636_v7 = vadd.f32 %v3865_v47, %v4805_v36  ;;  %v2027_v54 = vmax.f32 %v1625_v42, 0.0  ;;  %v5101_v12 = vmin.f32 %v2029_v57, 6.0  ;;  %v1545_v42 = vadd.f32 %v4864_v41, %v4635_v53  ;;  %v6124_v33 = vld [vmem:[#allocation15_spill] sm:$0xff] }
 0x119   :  { %v5084_v62 = vpop.permute.xlu0 %643  ;;  %v1627_v14 = vpop.f32.mrf.mxu0  ;;  %3571 = vmatpush3.bf16.msra.mxu0 %v2316_v60  ;;  %3964 = vmatpush3.bf16.msra.mxu1 %v2316_v60  ;;  %v2322_v58 = vpack.c.bf16 %v2142_v51, %v2141_v3  ;;  %v2139_v52 = vmin.f32 %v2011_v19, 6.0  ;;  %v2138_v0 = vmin.f32 %v2010_v49, 6.0  ;;  %v2008_v18 = vmax.f32 %v1548_v31, 0.0  ;;  %v6115_v49 = vld [vmem:[#allocation33_spill] sm:$0xff] }
 0x11a   :  { %v5082_v37 = vpop.permute.xlu1 %648  ;;  %6104 = vst [vmem:[#allocation48_spill] sm:$0xff] %v5084_v62  ;;  %2453 = vperm.xlu0 %3971, %v2387_v8   ;;  %v2030_v34 = vmax.f32 %v1636_v7, 0.0  ;;  %v1628_v36 = vadd.f32 %v1627_v14, %v4841_v24  ;;  %3572 = vmatprep.subr.bf16.mxu0 %v2323_v27  ;;  %v2315_v24 = vpack.c.bf16 %v2128_v13, %v2127_v23  ;;  %v5113_v11 = vmin.f32 %v2027_v54, 6.0  ;;  %v6143_v62 = vld [vmem:[#allocation13_spill] sm:$0xff] }
 0x11b   :  { %6103 = vst [vmem:[#allocation47_spill] sm:$0xff] %v5082_v37  ;;  %2458 = vperm.xlu1 %3972, %v2388_v20   ;;  %3957 = vmatprep.subr.bf16.mxu1 %v2323_v27  ;;  %v5099_v10 = vpop.f32.mrf.mxu0  ;;  %v2321_v63 = vpack.c.bf16 %v2140_v5, %v2139_v52  ;;  %v2137_v53 = vmin.f32 %v2009_v35, 6.0  ;;  %v2007_v41 = vmax.f32 %v1545_v42, 0.0  ;;  %v2136_v51 = vmin.f32 %v2008_v18, 6.0  ;;  %v6110_v27 = vld [vmem:[#allocation24_spill] sm:$0xff]  ;;  %v6118_v18 = vld [vmem:[#allocation3_spill] sm:$0xff] }
 0x11c   :  { %v5103_v28 = vmin.f32 %v2030_v34, 6.0  ;;  %v2028_v45 = vmax.f32 %v1628_v36, 0.0  ;;  %v6111_v36 = vld [vmem:[#allocation18_spill] sm:$0xff] }
 0x11d   :  { %v5107_v46 = vpop.permute.xlu0 %713  ;;  %v5111_v55 = vpop.f32.mrf.mxu0  ;;  %3573 = vmatpush3.bf16.msra.mxu0 %v2315_v24  ;;  %3965 = vmatpush3.bf16.msra.mxu1 %v2315_v24  ;;  %v2320_v25 = vpack.c.bf16 %v2138_v0, %v2137_v53  ;;  %v2135_v14 = vmin.f32 %v2007_v41, 6.0  ;;  %v6117_v0 = vld [vmem:[#allocation2_spill] sm:$0xff] }
 0x11e   :  { %v5105_v50 = vpop.permute.xlu1 %718  ;;  %6107 = vst [vmem:[#allocation50_spill] sm:$0xff] %v5107_v46  ;;  %2463 = vperm.xlu0 %3971, %v2389_v30   ;;  %v5117_v26 = vmin.f32 %v2028_v45, 6.0  ;;  %3574 = vmatprep.subr.bf16.mxu0 %v2322_v58  ;;  %v2263_v30 = vld [vmem:[%s6048_s3 + $0x80] sm:$0xff] }
 0x11f   :  { %6106 = vst [vmem:[#allocation49_spill] sm:$0xff] %v5105_v50  ;;  %2468 = vperm.xlu1 %3972, %v2390_v56   ;;  %3958 = vmatprep.subr.bf16.mxu1 %v2322_v58  ;;  %v5121_v61 = vpop.f32.mrf.mxu0  ;;  %v2319_v34 = vpack.c.bf16 %v2136_v51, %v2135_v14  ;;  %v6114_v45 = vld [vmem:[#allocation34_spill] sm:$0xff]  ;;  %v6116_v58 = vld [vmem:[#allocation19_spill] sm:$0xff]  ;;  %v3453_v5 = vcombine.high %v2263_v30, %v2267_v22 }
 0x120   :  { %v3436_v31 = vcombine.low %v6115_v49, %v6114_v45  ;;  %v2275_v51 = vld [vmem:[%s6048_s3 + $0xe0] sm:$0xff] }
 0x121   :  { %v5127_v60 = vpop.permute.xlu0 %633  ;;  %v5129_v47 = vpop.f32.mrf.mxu0  ;;  %3575 = vmatpush3.bf16.msra.mxu0 %v4790_v9  ;;  %3966 = vmatpush3.bf16.msra.mxu1 %v4790_v9  ;;  %v6133_v46 = vld [vmem:[#allocation14_spill] sm:$0xff] }
 0x122   :  { %v5125_v8 = vpop.permute.xlu1 %638  ;;  %3576 = vmatprep.subr.bf16.mxu0 %v2321_v63  ;;  %3959 = vmatprep.subr.bf16.mxu1 %v2321_v63  ;;  %v6119_v63 = vcombine.low %v6117_v0, %v6118_v18  ;;  %v2279_v18 = vld [vmem:[%s6048_s3 + $0x100] sm:$0xff]  ;;  %v1652_v50 = vadd.f32 %v5121_v61, %v6133_v46 }
 0x123   :  { %v5133_v13 = vpop.f32.mrf.mxu0 }
 0x125   :  { %v5137_v7 = vpop.permute.xlu0 %703  ;;  %v5139_v21 = vpop.f32.mrf.mxu0  ;;  %3577 = vmatpush3.bf16.msra.mxu0 %v6110_v27  ;;  %3967 = vmatpush3.bf16.msra.mxu1 %v6110_v27 }
 0x126   :  { %v5135_v57 = vpop.permute.xlu1 %708  ;;  %6109 = vst [vmem:[#allocation52_spill] sm:$0xff] %v5137_v7  ;;  %3578 = vmatprep.subr.bf16.mxu0 %v2320_v25  ;;  %3960 = vmatprep.subr.bf16.mxu1 %v2320_v25  ;;  %v2271_v25 = vld [vmem:[%s6048_s3 + $0xc0] sm:$0xff] }
 0x127   :  { %6108 = vst [vmem:[#allocation51_spill] sm:$0xff] %v5135_v57  ;;  %v3873_v9 = vpop.f32.mrf.mxu0  ;;  %v3461_v45 = vcombine.high %v2271_v25, %v2275_v51  ;;  %v3460_v38 = vcombine.low %v2271_v25, %v2275_v51  ;;  %v5229_v25 = vld [vmem:[%s6048_s3 + $0x160] sm:$0xff] }
 0x128   :  { %v5260_v57 = vld [vmem:[%s6048_s3 + $0x1e0] sm:$0xff] }
 0x129   :  { %v5145_v23 = vpop.permute.xlu0 %623  ;;  %v5147_v54 = vpop.f32.mrf.mxu0  ;;  %3579 = vmatpush3.bf16.msra.mxu0 %v6111_v36  ;;  %3968 = vmatpush3.bf16.msra.mxu1 %v6111_v36  ;;  %v3452_v36 = vcombine.low %v2263_v30, %v2267_v22  ;;  %v2283_v30 = vld [vmem:[%s6048_s3 + $0x120] sm:$0xff] }
 0x12a   :  { %v5143_v1 = vpop.permute.xlu1 %628  ;;  %3580 = vmatprep.subr.bf16.mxu0 %v2319_v34  ;;  %3961 = vmatprep.subr.bf16.mxu1 %v2319_v34 }
 0x12b   :  { %v5151_v56 = vpop.f32.mrf.mxu0 }
 0x12d   :  { %v5161_v19 = vpop.permute.xlu0 %693  ;;  %v5163_v24 = vpop.f32.mrf.mxu0  ;;  %3581 = vmatpush3.bf16.msra.mxu0 %v6116_v58  ;;  %3969 = vmatpush3.bf16.msra.mxu1 %v6116_v58 }
 0x12e   :  { %v5159_v3 = vpop.permute.xlu1 %698  ;;  %6113 = vst [vmem:[#allocation18_spill] sm:$0xff] %v5161_v19 }
 0x12f   :  { %6112 = vst [vmem:[#allocation24_spill] sm:$0xff] %v5159_v3  ;;  %v5169_v35 = vpop.f32.mrf.mxu0  ;;  %v6127_v3 = vld [vmem:[#allocation6_spill] sm:$0xff] }
 0x130   :  { %2824 = vmatmul.mubr.bf16.vlgmr.msra.gmra.mxu0 %v3436_v31  ;;  %2832 = vmatmul.mubr.bf16.vlgmr.msra.gmra.mxu1 %v6119_v63  ;;  %v1668_v7 = vadd.f32 %v3873_v9, %v6127_v3  ;;  %v5239_v9 = vld [vmem:[%s6048_s3 + $0x180] sm:$0xff] }
 0x131   :  { %v5173_v52 = vpop.permute.xlu0 %613  ;;  %v5178_v53 = vpop.f32.mrf.mxu0  ;;  %2839 = vmatprep.mubr.bf16.mxu1 %v3453_v5  ;;  %v5244_v3 = vld [vmem:[%s6048_s3 + $0x1a0] sm:$0xff] }
 0x132   :  { %v5171_v42 = vpop.permute.xlu1 %618  ;;  %v3485_v59 = vcombine.high %v5239_v9, %v5244_v3 }
 0x133   :  { %v5180_v41 = vpop.f32.mrf.mxu0 }
 0x135   :  { %v5190_v14 = vpop.permute.xlu0 %683  ;;  %v5192_v34 = vpop.f32.mrf.mxu0 }
 0x136   :  { %v5188_v27 = vpop.permute.xlu1 %688  ;;  %6121 = vst [vmem:[#allocation33_spill] sm:$0xff] %v5190_v14 }
 0x137   :  { %6120 = vst [vmem:[#allocation34_spill] sm:$0xff] %v5188_v27  ;;  %v5194_v49 = vpop.f32.mrf.mxu0 }
 0x138   :  { %2840 = vmatmul.mubr.bf16.gmra.mxu1 %v3452_v36  ;;  %v3469_v36 = vcombine.high %v2279_v18, %v2283_v30 }
 0x139   :  { %v5198_v58 = vpop.permute.xlu0 %603  ;;  %v5200_v5 = vpop.f32.mrf.mxu0  ;;  %2847 = vmatprep.mubr.bf16.mxu1 %v3461_v45  ;;  %v1649_v45 = vadd.f32 %v5099_v10, %v6124_v33  ;;  %v6128_v33 = vld [vmem:[#allocation5_spill] sm:$0xff] }
 0x13a   :  { %v5196_v31 = vpop.permute.xlu1 %608 }
 0x13b   :  { %v3884_v0 = vpop.f32.mrf.mxu0  ;;  %v2033_v10 = vmax.f32 %v1649_v45, 0.0  ;;  %v6132_v45 = vld [vmem:[#allocation7_spill] sm:$0xff] }
 0x13d   :  { %v5210_v63 = vpop.permute.xlu0 %913  ;;  %v5212_v39 = vpop.f32.mrf.mxu0  ;;  %v5275_v46 = vmin.f32 %v2033_v10, 6.0 }
 0x13e   :  { %v5208_v22 = vpop.permute.xlu1 %918  ;;  %6123 = vst [vmem:[#allocation2_spill] sm:$0xff] %v5210_v63  ;;  %v5224_v63 = vld [vmem:[%s6048_s3 + $0x140] sm:$0xff] }
 0x13f   :  { %6122 = vst [vmem:[#allocation19_spill] sm:$0xff] %v5208_v22  ;;  %v3885_v20 = vpop.f32.mrf.mxu0 }
 0x140   :  { %2848 = vmatmul.mubr.bf16.gmra.mxu1 %v3460_v38  ;;  %v1716_v43 = vadd.f32 %v3885_v20, %v6139_v44 }
 0x141   :  { %v5218_v27 = vpop.permute.xlu0 %833  ;;  %v1707_v19 = vpop.f32.mrf.mxu0  ;;  %2855 = vmatprep.mubr.bf16.mxu1 %v3469_v36  ;;  %v6131_v36 = vld [vmem:[#allocation21_spill] sm:$0xff] }
 0x142   :  { %v5216_v14 = vpop.permute.xlu1 %838  ;;  %6126 = vst [vmem:[#allocation15_spill] sm:$0xff] %v5218_v27 }
 0x143   :  { %6125 = vst [vmem:[#allocation3_spill] sm:$0xff] %v5216_v14  ;;  %v3888_v22 = vpop.f32.mrf.mxu0  ;;  %v5248_v14 = vadd.f32 %v5111_v55, %v6131_v36  ;;  %v6134_v55 = vld [vmem:[#allocation9_spill] sm:$0xff] }
 0x144   :  { %v1729_v51 = vadd.f32 %v3888_v22, %v6128_v33  ;;  %v1665_v22 = vadd.f32 %v5133_v13, %v6132_v45  ;;  %v3477_v13 = vcombine.high %v5224_v63, %v5229_v25  ;;  %v6135_v45 = vld [vmem:[#allocation10_spill] sm:$0xff] }
 0x145   :  { %v5234_v38 = vpop.permute.xlu0 %903  ;;  %v1720_v33 = vpop.f32.mrf.mxu0  ;;  %v1660_v32 = vadd.f32 %v5147_v54, %v6135_v45 }
 0x146   :  { %v5232_v27 = vpop.permute.xlu1 %908  ;;  %6130 = vst [vmem:[#allocation5_spill] sm:$0xff] %v5234_v38  ;;  %v5255_v38 = vld [vmem:[%s6048_s3 + $0x1c0] sm:$0xff]  ;;  %v1721_v36 = vadd.f32 %v1720_v33, %v6134_v55  ;;  %v2053_v61 = vmax.f32 %v1729_v51, 0.0  ;;  %v6136_v33 = vld [vmem:[#allocation4_spill] sm:$0xff]  ;;  %v2037_v54 = vmax.f32 %v1665_v22, 0.0  ;;  %v2034_v51 = vmax.f32 %v1652_v50, 0.0 }
 0x147   :  { %6129 = vst [vmem:[#allocation6_spill] sm:$0xff] %v5232_v27  ;;  %v3468_v27 = vcombine.low %v2279_v18, %v2283_v30  ;;  %v3476_v18 = vcombine.low %v5224_v63, %v5229_v25  ;;  %v2038_v30 = vmax.f32 %v1668_v7, 0.0  ;;  %v3889_v15 = vpop.f32.mrf.mxu0  ;;  %v6138_v25 = vld [vmem:[#allocation11_spill] sm:$0xff]  ;;  %v5291_v7 = vadd.f32 %v5129_v47, %v6142_v40 }
 0x148   :  { %v1732_v55 = vadd.f32 %v3889_v15, %v6136_v33  ;;  %v1657_v45 = vadd.f32 %v5139_v21, %v6138_v25  ;;  %v2051_v37 = vmax.f32 %v1721_v36, 0.0  ;;  %v6141_v33 = vld [vmem:[#allocation8_spill] sm:$0xff]  ;;  %v2036_v63 = vmax.f32 %v1660_v32, 0.0 }
 0x149   :  { %v5278_v2 = vpop.permute.xlu0 %823  ;;  %2856 = vmatmul.mubr.bf16.gmra.mxu1 %v3468_v27  ;;  %v1723_v10 = vpop.f32.mrf.mxu0  ;;  %v2166_v22 = vmin.f32 %v2038_v30, 6.0  ;;  %v1713_v21 = vadd.f32 %v3884_v0, %v6143_v62  ;;  %v2181_v44 = vmin.f32 %v2053_v61, 6.0  ;;  %v2165_v36 = vmin.f32 %v2037_v54, 6.0 }
 0x14a   :  { %6137 = vst [vmem:[#allocation21_spill] sm:$0xff] %v5278_v2  ;;  %v5286_v4 = vpop.permute.xlu1 %828  ;;  %v2054_v15 = vmax.f32 %v1732_v55, 0.0  ;;  %v1724_v2 = vadd.f32 %v1723_v10, %v6141_v33  ;;  %2863 = vmatprep.mubr.bf16.mxu1 %v3477_v13  ;;  %v2035_v55 = vmax.f32 %v1657_v45, 0.0  ;;  %v2050_v10 = vmax.f32 %v1716_v43, 0.0  ;;  %v6145_v13 = vld [vmem:[#allocation16_spill] sm:$0xff] }
 0x14b   :  { %6140 = vst [vmem:[#allocation7_spill] sm:$0xff] %v5286_v4  ;;  %v3892_v25 = vpop.f32.mrf.mxu0  ;;  %v1708_v33 = vadd.f32 %v1707_v19, %v6145_v13  ;;  %v2179_v40 = vmin.f32 %v2051_v37, 6.0  ;;  %v5299_v62 = vmin.f32 %v2034_v51, 6.0  ;;  %v2164_v0 = vmin.f32 %v2036_v63, 6.0 }
 0x14c   :  { %v2182_v20 = vmin.f32 %v2054_v15, 6.0  ;;  %v2052_v4 = vmax.f32 %v1724_v2, 0.0  ;;  %v1745_v27 = vadd.f32 %v3892_v25, %v5173_v52  ;;  %v2049_v61 = vmax.f32 %v1713_v21, 0.0  ;;  %v6146_v2 = vld [vmem:[#allocation17_spill] sm:$0xff] }
 0x14d   :  { %v5295_v50 = vpop.permute.xlu0 %893  ;;  %v1736_v17 = vpop.f32.mrf.mxu0  ;;  %v1705_v52 = vadd.f32 %v5212_v39, %v6146_v2  ;;  %v2334_v45 = vpack.c.bf16 %v2166_v22, %v2165_v36  ;;  %v2163_v37 = vmin.f32 %v2035_v55, 6.0  ;;  %v2048_v51 = vmax.f32 %v1708_v33, 0.0 }
 0x14e   :  { %6144 = vst [vmem:[#allocation14_spill] sm:$0xff] %v5295_v50  ;;  %v2342_v47 = vpack.c.bf16 %v2182_v20, %v2181_v44  ;;  %v2180_v30 = vmin.f32 %v2052_v4, 6.0  ;;  %v1737_v32 = vadd.f32 %v1736_v17, %v5198_v58  ;;  %v5303_v15 = vpop.permute.xlu1 %898  ;;  %v2057_v25 = vmax.f32 %v1745_v27, 0.0  ;;  %v6148_v4 = vld [vmem:[#allocation22_spill] sm:$0xff]  ;;  %v6150_v27 = vld [vmem:[#allocation23_spill] sm:$0xff] }
 0x14f   :  { %6147 = vst [vmem:[#allocation9_spill] sm:$0xff] %v5303_v15  ;;  %v3893_v54 = vpop.f32.mrf.mxu0  ;;  %v1700_v17 = vadd.f32 %v5194_v49, %v6148_v4  ;;  %v2178_v58 = vmin.f32 %v2050_v10, 6.0  ;;  %v2032_v39 = vmax.f32 %v5291_v7, 0.0  ;;  %v1697_v36 = vadd.f32 %v5180_v41, %v6150_v27 }
 0x150   :  { %v2341_v43 = vpack.c.bf16 %v2180_v30, %v2179_v40  ;;  %v1748_v19 = vadd.f32 %v3893_v54, %v5171_v42  ;;  %3630 = vmatprep.subr.bf16.mxu1 %v2342_v47  ;;  %v2055_v44 = vmax.f32 %v1737_v32, 0.0  ;;  %v2333_v42 = vpack.c.bf16 %v2164_v0, %v2163_v37  ;;  %v6151_v47 = vld [vmem:[#allocation25_spill] sm:$0xff] }
 0x151   :  { %v5308_v63 = vpop.permute.xlu0 %813  ;;  %2864 = vmatmul.mubr.bf16.gmra.mxu1 %v3476_v18  ;;  %v1739_v21 = vpop.f32.mrf.mxu0  ;;  %v2177_v55 = vmin.f32 %v2049_v61, 6.0  ;;  %v2047_v49 = vmax.f32 %v1705_v52, 0.0  ;;  %v5314_v13 = vmin.f32 %v2057_v25, 6.0  ;;  %v2046_v40 = vmax.f32 %v1700_v17, 0.0 }
 0x152   :  { %6149 = vst [vmem:[#allocation10_spill] sm:$0xff] %v5308_v63  ;;  %v2058_v20 = vmax.f32 %v1748_v19, 0.0  ;;  %v1740_v22 = vadd.f32 %v1739_v21, %v5196_v31  ;;  %3631 = vmatpush3.bf16.msra.mxu1 %v2334_v45  ;;  %2871 = vmatprep.mubr.bf16.mxu1 %v3485_v59  ;;  %v1692_v31 = vadd.f32 %v5200_v5, %v6151_v47  ;;  %v2176_v30 = vmin.f32 %v2048_v51, 6.0  ;;  %v5321_v32 = vpop.permute.xlu1 %818  ;;  %v6153_v5 = vld [vmem:[#allocation26_spill] sm:$0xff] }
 0x153   :  { %3632 = vmatprep.subr.bf16.mxu1 %v2341_v43  ;;  %v3896_v10 = vpop.f32.mrf.mxu0  ;;  %v2340_v59 = vpack.c.bf16 %v2178_v58, %v2177_v55  ;;  %6152 = vst [vmem:[#allocation4_spill] sm:$0xff] %v5321_v32  ;;  %v5323_v0 = vmin.f32 %v2055_v44, 6.0  ;;  %v2045_v54 = vmax.f32 %v1697_v36, 0.0  ;;  %v1689_v45 = vadd.f32 %v5192_v34, %v6153_v5  ;;  %v6155_v58 = vld [vmem:[#allocation27_spill] sm:$0xff]  ;;  %v6190_v63 = vld [vmem:[#allocation42_spill] sm:$0xff] }
 0x154   :  { %v5316_v18 = vmin.f32 %v2058_v20, 6.0  ;;  %v2056_v33 = vmax.f32 %v1740_v22, 0.0  ;;  %v1761_v7 = vadd.f32 %v3896_v10, %v5127_v60  ;;  %v2332_v60 = vpack.c.bf16 %v5299_v62, %v5275_v46  ;;  %v2252_v10 = vld [vmem:[%s6048_s3 + $0x28] sm:$0xff] }
 0x155   :  { %v1752_v41 = vpop.f32.mrf.mxu0  ;;  %v2175_v43 = vmin.f32 %v2047_v49, 6.0  ;;  %v5334_v25 = vpop.permute.xlu0 %883  ;;  %v2160_v37 = vmin.f32 %v2032_v39, 6.0  ;;  %v1684_v51 = vadd.f32 %v5169_v35, %v6155_v58  ;;  %v2174_v46 = vmin.f32 %v2046_v40, 6.0  ;;  %v6159_v35 = vld [vmem:[#allocation28_spill] sm:$0xff] }
 0x156   :  { %v5327_v2 = vmin.f32 %v2056_v33, 6.0  ;;  %v1753_v52 = vadd.f32 %v1752_v41, %v5145_v23  ;;  %3633 = vmatpush3.bf16.msra.mxu1 %v2333_v42  ;;  %6154 = vst [vmem:[#allocation11_spill] sm:$0xff] %v5334_v25  ;;  %v2061_v17 = vmax.f32 %v1761_v7, 0.0  ;;  %v2044_v62 = vmax.f32 %v1692_v31, 0.0  ;;  %v6161_v31 = vld [vmem:[#allocation29_spill] sm:$0xff] }
 0x157   :  { %3634 = vmatprep.subr.bf16.mxu1 %v2340_v59  ;;  %v3897_v19 = vpop.f32.mrf.mxu0  ;;  %v2339_v21 = vpack.c.bf16 %v2176_v30, %v2175_v43  ;;  %v6156_v34 = vcombine.low %v5239_v9, %v5244_v3  ;;  %v6157_v20 = vmax.f32 %v5248_v14, 0.0  ;;  %v1681_v36 = vadd.f32 %v5151_v56, %v6159_v35  ;;  %v5352_v9 = vpop.permute.xlu1 %888  ;;  %v6163_v43 = vld [vmem:[#allocation30_spill] sm:$0xff] }
 0x158   :  { %v1764_v23 = vadd.f32 %v3897_v19, %v5125_v8  ;;  %v2059_v22 = vmax.f32 %v1753_v52, 0.0  ;;  %v6158_v8 = vcombine.high %v5255_v38, %v5260_v57  ;;  %v2173_v55 = vmin.f32 %v2045_v54, 6.0  ;;  %6160 = vst [vmem:[#allocation12_spill] sm:$0xff] %v5352_v9  ;;  %v6187_v9 = vld [vmem:[#allocation37_spill] sm:$0xff] }
 0x159   :  { %2872 = vmatmul.mubr.bf16.gmra.mxu1 %v6156_v34  ;;  %v1755_v44 = vpop.f32.mrf.mxu0  ;;  %v2159_v39 = vmin.f32 %v6157_v20, 6.0  ;;  %v2043_v49 = vmax.f32 %v1689_v45, 0.0  ;;  %v3492_v14 = vcombine.low %v5255_v38, %v5260_v57  ;;  %v5364_v56 = vmin.f32 %v2061_v17, 6.0  ;;  %v5370_v38 = vpop.permute.xlu0 %803  ;;  %v5502_v17 = vld [vmem:[%s6048_s3 + $0x1a8] sm:$0xff] }
 0x15a   :  { %v2062_v42 = vmax.f32 %v1764_v23, 0.0  ;;  %v1756_v27 = vadd.f32 %v1755_v44, %v5143_v1  ;;  %3635 = vmatpush3.bf16.msra.mxu1 %v2332_v60  ;;  %2879 = vmatprep.mubr.bf16.mxu1 %v6158_v8  ;;  %v2248_v1 = vld [vmem:[%s6048_s3 + $0x8] sm:$0xff]  ;;  %v2042_v47 = vmax.f32 %v1684_v51, 0.0  ;;  %v1676_v59 = vadd.f32 %v5178_v53, %v6161_v31  ;;  %6162 = vst [vmem:[#allocation8_spill] sm:$0xff] %v5370_v38 }
 0x15b   :  { %3636 = vmatprep.subr.bf16.mxu1 %v2339_v21  ;;  %v5354_v3 = vpop.f32.mrf.mxu0  ;;  %v2331_v33 = vpack.c.bf16 %v2160_v37, %v2159_v39  ;;  %v2338_v30 = vpack.c.bf16 %v2174_v46, %v2173_v55  ;;  %v2172_v57 = vmin.f32 %v2044_v62, 6.0  ;;  %v5374_v52 = vmin.f32 %v2059_v22, 6.0  ;;  %v5386_v46 = vpop.permute.xlu1 %808  ;;  %v6180_v60 = vld [vmem:[#allocation43_spill] sm:$0xff] }
 0x15c   :  { %v5366_v7 = vmin.f32 %v2062_v42, 6.0  ;;  %v2060_v40 = vmax.f32 %v1756_v27, 0.0  ;;  %v3439_v5 = vcombine.high %v2248_v1, %v2252_v10  ;;  %v2041_v45 = vmax.f32 %v1681_v36, 0.0  ;;  %6164 = vst [vmem:[#allocation20_spill] sm:$0xff] %v5386_v46 }
 0x15d   :  { %v5372_v41 = vpop.f32.mrf.mxu0  ;;  %v1673_v19 = vadd.f32 %v5163_v24, %v6163_v43  ;;  %v2171_v53 = vmin.f32 %v2043_v49, 6.0  ;;  %v2170_v23 = vmin.f32 %v2042_v47, 6.0  ;;  %v2040_v58 = vmax.f32 %v1676_v59, 0.0  ;;  %v5393_v44 = vpop.permute.xlu0 %873 }
 0x15e   :  { %v5378_v54 = vmin.f32 %v2060_v40, 6.0  ;;  %3637 = vmatpush3.bf16.msra.mxu1 %v2331_v33  ;;  %v6165_v21 = vpack.c.bf16 %v5103_v28, %v5101_v12  ;;  %v2169_v24 = vmin.f32 %v2041_v45, 6.0  ;;  %6166 = vst [vmem:[#allocation13_spill] sm:$0xff] %v5393_v44  ;;  %v6167_v27 = vpack.c.bf16 %v5117_v26, %v5113_v11  ;;  %v2256_v11 = vld [vmem:[%s6048_s3 + $0x48] sm:$0xff] }
 0x15f   :  { %3638 = vmatprep.subr.bf16.mxu1 %v2338_v30  ;;  %v5382_v37 = vpop.f32.mrf.mxu0  ;;  %v2337_v51 = vpack.c.bf16 %v2172_v57, %v2171_v53  ;;  %v2039_v34 = vmax.f32 %v1673_v19, 0.0  ;;  %v2168_v22 = vmin.f32 %v2040_v58, 6.0  ;;  %v5402_v35 = vpop.permute.xlu1 %878  ;;  %v6169_v49 = vpack.c.bf16 %v5054_v6, %v5052_v29  ;;  %v2260_v26 = vld [vmem:[%s6048_s3 + $0x68] sm:$0xff] }
 0x160   :  { %v2336_v39 = vpack.c.bf16 %v2170_v23, %v2169_v24  ;;  %6168 = vst [vmem:[#allocation16_spill] sm:$0xff] %v5402_v35  ;;  %v3438_v47 = vcombine.low %v2248_v1, %v2252_v10  ;;  %v6170_v29 = vpack.c.bf16 %v5067_v48, %v5063_v16  ;;  %v3447_v6 = vcombine.high %v2256_v11, %v2260_v26  ;;  %v2264_v1 = vld [vmem:[%s6048_s3 + $0x88] sm:$0xff] }
 0x161   :  { %2880 = vmatmul.mubr.bf16.gmra.mxu1 %v3492_v14  ;;  %v5388_v62 = vpop.f32.mrf.mxu0  ;;  %v2167_v8 = vmin.f32 %v2039_v34, 6.0  ;;  %v5404_v36 = vpop.permute.xlu0 %793  ;;  %v2268_v16 = vld [vmem:[%s6048_s3 + $0xa8] sm:$0xff]  ;;  %v3446_v45 = vcombine.low %v2256_v11, %v2260_v26 }
 0x162   :  { %3639 = vmatpush3.bf16.msra.mxu1 %v6165_v21  ;;  %2920 = vmatprep.mubr.bf16.mxu1 %v3439_v5  ;;  %v3455_v43 = vcombine.high %v2264_v1, %v2268_v16  ;;  %v2272_v21 = vld [vmem:[%s6048_s3 + $0xc8] sm:$0xff] }
 0x163   :  { %3640 = vmatprep.subr.bf16.mxu1 %v2337_v51  ;;  %v5395_v20 = vpop.f32.mrf.mxu0  ;;  %v2335_v28 = vpack.c.bf16 %v2168_v22, %v2167_v8  ;;  %v5419_v33 = vpop.permute.xlu1 %798  ;;  %v2276_v24 = vld [vmem:[%s6048_s3 + $0xe8] sm:$0xff] }
 0x164   :  { %v3463_v22 = vcombine.high %v2272_v21, %v2276_v24 }
 0x165   :  { %v5397_v42 = vpop.f32.mrf.mxu0  ;;  %v5426_v31 = vpop.permute.xlu0 %863 }
 0x166   :  { %3641 = vmatpush3.bf16.msra.mxu1 %v6167_v27  ;;  %6171 = vst [vmem:[#allocation17_spill] sm:$0xff] %v5426_v31 }
 0x167   :  { %3642 = vmatprep.subr.bf16.mxu1 %v2336_v39  ;;  %v3905_v12 = vpop.f32.mrf.mxu0  ;;  %v5432_v57 = vpop.permute.xlu1 %868  ;;  %v3454_v39 = vcombine.low %v2264_v1, %v2268_v16  ;;  %v5475_v1 = vld [vmem:[%s6048_s3 + $0x128] sm:$0xff] }
 0x168   :  { %6172 = vst [vmem:[#allocation22_spill] sm:$0xff] %v5432_v57 }
 0x169   :  { %v5406_v55 = vpop.f32.mrf.mxu0  ;;  %v5442_v48 = vpop.permute.xlu0 %783 }
 0x16a   :  { %3643 = vmatpush3.bf16.msra.mxu1 %v6169_v49 }
 0x16b   :  { %3644 = vmatprep.subr.bf16.mxu1 %v2335_v28  ;;  %v5411_v14 = vpop.f32.mrf.mxu0  ;;  %v5448_v53 = vpop.permute.xlu1 %788  ;;  %v6175_v28 = vld [vmem:[#allocation44_spill] sm:$0xff] }
 0x16c   :  { %v1777_v49 = vadd.f32 %v5354_v3, %v6175_v28 }
 0x16d   :  { %v5421_v40 = vpop.f32.mrf.mxu0  ;;  %v5452_v58 = vpop.permute.xlu0 %853 }
 0x16e   :  { %3645 = vmatpush3.bf16.msra.mxu1 %v6170_v29  ;;  %6173 = vst [vmem:[#allocation23_spill] sm:$0xff] %v5452_v58  ;;  %v2065_v16 = vmax.f32 %v1777_v49, 0.0 }
 0x16f   :  { %v5428_v59 = vpop.f32.mrf.mxu0  ;;  %v5462_v27 = vpop.permute.xlu1 %858 }
 0x170   :  { %6174 = vst [vmem:[#allocation25_spill] sm:$0xff] %v5462_v27 }
 0x171   :  { %2921 = vmatmul.mubr.bf16.vlgmr.msra.gmra.mxu1 %v3438_v47  ;;  %v5430_v30 = vpop.f32.mrf.mxu0  ;;  %v774_v11 = vpop.permute.xlu0 %773  ;;  %v6176_v47 = vld [vmem:[#allocation35_spill] sm:$0xff] }
 0x172   :  { %2928 = vmatprep.mubr.bf16.mxu1 %v3447_v6  ;;  %v1796_v29 = vadd.f32 %v3905_v12, %v6176_v47  ;;  %v5486_v12 = vld [vmem:[%s6048_s3 + $0x168] sm:$0xff]  ;;  %v6179_v47 = vld [vmem:[#allocation36_spill] sm:$0xff] }
 0x173   :  { %v5434_v5 = vpop.f32.mrf.mxu0  ;;  %v1793_v4 = vadd.f32 %v5395_v20, %v6179_v47  ;;  %v779_v49 = vpop.permute.xlu1 %778  ;;  %v6182_v47 = vld [vmem:[#allocation39_spill] sm:$0xff] }
 0x174   :  { %v1788_v27 = vadd.f32 %v5406_v55, %v6182_v47 }
 0x175   :  { %v5444_v10 = vpop.f32.mrf.mxu0  ;;  %v5513_v31 = vpop.permute.xlu0 %843  ;;  %v2069_v55 = vmax.f32 %v1793_v4, 0.0 }
 0x176   :  { %6183 = vst [vmem:[#allocation26_spill] sm:$0xff] %v5513_v31  ;;  %v6186_v31 = vld [vmem:[#allocation41_spill] sm:$0xff] }
 0x177   :  { %v5446_v19 = vpop.f32.mrf.mxu0  ;;  %v5533_v4 = vpop.permute.xlu1 %848 }
 0x178   :  { %6189 = vst [vmem:[#allocation27_spill] sm:$0xff] %v5533_v4 }
 0x179   :  { %2929 = vmatmul.mubr.bf16.gmra.mxu1 %v3446_v45  ;;  %v5450_v23 = vpop.f32.mrf.mxu0  ;;  %v5470_v45 = vld [vmem:[%s6048_s3 + $0x108] sm:$0xff]  ;;  %v764_v50 = vpop.permute.xlu0 %763 }
 0x17a   :  { %2936 = vmatprep.mubr.bf16.mxu1 %v3455_v43  ;;  %v6177_v43 = vld [vmem:[#allocation32_spill] sm:$0xff]  ;;  %v3471_v20 = vcombine.high %v5470_v45, %v5475_v1 }
 0x17b   :  { %v3916_v51 = vpop.f32.mrf.mxu0 }
 0x17d   :  { %v5460_v34 = vpop.f32.mrf.mxu0 }
 0x17f   :  { %v3917_v8 = vpop.f32.mrf.mxu0 }
 0x180   :  { %v1844_v35 = vadd.f32 %v3917_v8, %v6186_v31 }
 0x181   :  { %2937 = vmatmul.mubr.bf16.gmra.mxu1 %v3454_v39  ;;  %v1835_v26 = vpop.f32.mrf.mxu0  ;;  %v5481_v39 = vld [vmem:[%s6048_s3 + $0x148] sm:$0xff] }
 0x182   :  { %2944 = vmatprep.mubr.bf16.mxu1 %v3463_v22  ;;  %v6178_v22 = vld [vmem:[#allocation48_spill] sm:$0xff]  ;;  %v3479_v44 = vcombine.high %v5481_v39, %v5486_v12 }
 0x183   :  { %v3920_v6 = vpop.f32.mrf.mxu0  ;;  %v5490_v28 = vadd.f32 %v5372_v41, %v6178_v22  ;;  %v1780_v41 = vadd.f32 %v5382_v37, %v6180_v60  ;;  %v6181_v22 = vld [vmem:[#allocation38_spill] sm:$0xff] }
 0x184   :  { %v1857_v3 = vadd.f32 %v3920_v6, %v6177_v43  ;;  %v3462_v6 = vcombine.low %v2272_v21, %v2276_v24  ;;  %v5497_v43 = vld [vmem:[%s6048_s3 + $0x188] sm:$0xff]  ;;  %v3470_v21 = vcombine.low %v5470_v45, %v5475_v1  ;;  %v2070_v24 = vmax.f32 %v1796_v29, 0.0  ;;  %v6185_v1 = vld [vmem:[#allocation40_spill] sm:$0xff] }
 0x185   :  { %v1848_v61 = vpop.f32.mrf.mxu0  ;;  %v1785_v47 = vadd.f32 %v5397_v42, %v6185_v1  ;;  %v2066_v25 = vmax.f32 %v1780_v41, 0.0  ;;  %v2068_v45 = vmax.f32 %v1788_v27, 0.0  ;;  %v1841_v42 = vadd.f32 %v3916_v51, %v6190_v63  ;;  %v6192_v51 = vld [vmem:[#allocation46_spill] sm:$0xff] }
 0x186   :  { %v1849_v58 = vadd.f32 %v1848_v61, %v6181_v22  ;;  %v5519_v61 = vmin.f32 %v2065_v16, 6.0  ;;  %v2085_v37 = vmax.f32 %v1857_v3, 0.0  ;;  %v6184_v22 = vld [vmem:[#allocation31_spill] sm:$0xff]  ;;  %v2198_v29 = vmin.f32 %v2070_v24, 6.0 }
 0x187   :  { %v3921_v57 = vpop.f32.mrf.mxu0  ;;  %v5537_v15 = vmin.f32 %v2066_v25, 6.0  ;;  %v2196_v4 = vmin.f32 %v2068_v45, 6.0  ;;  %v2081_v63 = vmax.f32 %v1841_v42, 0.0 }
 0x188   :  { %v1860_v38 = vadd.f32 %v3921_v57, %v6184_v22  ;;  %v2083_v60 = vmax.f32 %v1849_v58, 0.0  ;;  %v6188_v57 = vld [vmem:[#allocation47_spill] sm:$0xff]  ;;  %v2213_v31 = vmin.f32 %v2085_v37, 6.0  ;;  %v2197_v58 = vmin.f32 %v2069_v55, 6.0 }
 0x189   :  { %2945 = vmatmul.mubr.bf16.gmra.mxu1 %v3462_v6  ;;  %v1851_v46 = vpop.f32.mrf.mxu0  ;;  %v5531_v22 = vadd.f32 %v5388_v62, %v6188_v57  ;;  %v1833_v37 = vadd.f32 %v5460_v34, %v6192_v51  ;;  %v6196_v51 = vld [vmem:[#allocation52_spill] sm:$0xff] }
 0x18a   :  { %v2086_v16 = vmax.f32 %v1860_v38, 0.0  ;;  %v1852_v3 = vadd.f32 %v1851_v46, %v6187_v9  ;;  %2952 = vmatprep.mubr.bf16.mxu1 %v3471_v20  ;;  %v2067_v38 = vmax.f32 %v1785_v47, 0.0  ;;  %v2082_v9 = vmax.f32 %v1844_v35, 0.0  ;;  %v6191_v46 = vld [vmem:[#allocation45_spill] sm:$0xff] }
 0x18b   :  { %v3924_v1 = vpop.f32.mrf.mxu0  ;;  %v1836_v20 = vadd.f32 %v1835_v26, %v6191_v46  ;;  %v2211_v62 = vmin.f32 %v2083_v60, 6.0  ;;  %v6193_v26 = vld [vmem:[#allocation49_spill] sm:$0xff]  ;;  %v2064_v25 = vmax.f32 %v5531_v22, 0.0  ;;  %v6195_v46 = vld [vmem:[#allocation51_spill] sm:$0xff] }
 0x18c   :  { %v2214_v8 = vmin.f32 %v2086_v16, 6.0  ;;  %v2084_v6 = vmax.f32 %v1852_v3, 0.0  ;;  %v1873_v41 = vadd.f32 %v3924_v1, %v774_v11  ;;  %v2350_v11 = vpack.c.bf16 %v2198_v29, %v2197_v58  ;;  %v769_v1 = vpop.permute.xlu1 %768 }
 0x18d   :  { %v1864_v32 = vpop.f32.mrf.mxu0  ;;  %v2195_v35 = vmin.f32 %v2067_v38, 6.0  ;;  %v1828_v60 = vadd.f32 %v5446_v19, %v6193_v26 }
 0x18e   :  { %v2358_v57 = vpack.c.bf16 %v2214_v8, %v2213_v31  ;;  %v2212_v24 = vmin.f32 %v2084_v6, 6.0  ;;  %v1865_v27 = vadd.f32 %v1864_v32, %v764_v50  ;;  %v2089_v47 = vmax.f32 %v1873_v41, 0.0  ;;  %v6194_v8 = vld [vmem:[#allocation50_spill] sm:$0xff] }
 0x18f   :  { %v3925_v16 = vpop.f32.mrf.mxu0  ;;  %v2210_v31 = vmin.f32 %v2082_v9, 6.0  ;;  %v2080_v50 = vmax.f32 %v1836_v20, 0.0  ;;  %v2349_v29 = vpack.c.bf16 %v2196_v4, %v2195_v35  ;;  %v2209_v6 = vmin.f32 %v2081_v63, 6.0  ;;  %v6197_v35 = vld [vmem:[#allocation24_spill] sm:$0xff] }
 0x190   :  { %v2357_v55 = vpack.c.bf16 %v2212_v24, %v2211_v62  ;;  %v1876_v3 = vadd.f32 %v3925_v16, %v779_v49  ;;  %3694 = vmatprep.subr.bf16.mxu1 %v2358_v57  ;;  %v2087_v45 = vmax.f32 %v1865_v27, 0.0  ;;  %v1825_v49 = vadd.f32 %v5434_v5, %v6194_v8 }
 0x191   :  { %2953 = vmatmul.mubr.bf16.gmra.mxu1 %v3470_v21  ;;  %v1867_v32 = vpop.f32.mrf.mxu0  ;;  %v2079_v41 = vmax.f32 %v1833_v37, 0.0  ;;  %v5546_v58 = vmin.f32 %v2089_v47, 6.0  ;;  %v2078_v9 = vmax.f32 %v1828_v60, 0.0  ;;  %v1820_v20 = vadd.f32 %v5450_v23, %v6195_v46 }
 0x192   :  { %v2090_v42 = vmax.f32 %v1876_v3, 0.0  ;;  %v1868_v34 = vadd.f32 %v1867_v32, %v769_v1  ;;  %3695 = vmatpush3.bf16.msra.mxu1 %v2350_v11  ;;  %2960 = vmatprep.mubr.bf16.mxu1 %v3479_v44  ;;  %v2356_v44 = vpack.c.bf16 %v2210_v31, %v2209_v6  ;;  %v2208_v4 = vmin.f32 %v2080_v50, 6.0 }
 0x193   :  { %3696 = vmatprep.subr.bf16.mxu1 %v2357_v55  ;;  %v3928_v19 = vpop.f32.mrf.mxu0  ;;  %v5553_v57 = vmin.f32 %v2087_v45, 6.0  ;;  %v2077_v63 = vmax.f32 %v1825_v49, 0.0  ;;  %v1817_v23 = vadd.f32 %v5444_v10, %v6196_v51  ;;  %v2207_v37 = vmin.f32 %v2079_v41, 6.0  ;;  %v6202_v41 = vld [vmem:[#allocation34_spill] sm:$0xff] }
 0x194   :  { %v5548_v38 = vmin.f32 %v2090_v42, 6.0  ;;  %v2088_v21 = vmax.f32 %v1868_v34, 0.0  ;;  %v1889_v22 = vadd.f32 %v3928_v19, %v5404_v36  ;;  %v2348_v36 = vpack.c.bf16 %v5537_v15, %v5519_v61 }
 0x195   :  { %v1880_v62 = vpop.f32.mrf.mxu0  ;;  %v2192_v11 = vmin.f32 %v2064_v25, 6.0  ;;  %v2206_v26 = vmin.f32 %v2078_v9, 6.0  ;;  %v2076_v60 = vmax.f32 %v1820_v20, 0.0  ;;  %v2355_v15 = vpack.c.bf16 %v2208_v4, %v2207_v37  ;;  %v6203_v4 = vld [vmem:[#allocation33_spill] sm:$0xff] }
 0x196   :  { %v2360_v5 = vpack.c.bf16 %v5548_v38, %v5546_v58  ;;  %v5557_v24 = vmin.f32 %v2088_v21, 6.0  ;;  %v1881_v27 = vadd.f32 %v1880_v62, %v5442_v48  ;;  %3697 = vmatpush3.bf16.msra.mxu1 %v2349_v29  ;;  %v2093_v47 = vmax.f32 %v1889_v22, 0.0  ;;  %v2266_v38 = vld [vmem:[%s6048_s3 + $0x98] sm:$0xff] }
 0x197   :  { %3698 = vmatprep.subr.bf16.mxu1 %v2356_v44  ;;  %v3929_v16 = vpop.f32.mrf.mxu0  ;;  %v1812_v48 = vadd.f32 %v5428_v59, %v6197_v35  ;;  %v6198_v61 = vcombine.low %v5481_v39, %v5486_v12  ;;  %v6199_v1 = vmax.f32 %v5490_v28, 0.0  ;;  %v6201_v59 = vld [vmem:[#allocation18_spill] sm:$0xff]  ;;  %v2205_v42 = vmin.f32 %v2077_v63, 6.0  ;;  %v2308_v28 = vld [vmem:[%s6048_s3 + $0x1e8] sm:$0xff]  ;;  %v2253_v35 = vld [vmem:[%s6048_s3 + $0x30] sm:$0xff] }
 0x198   :  { %v2359_v55 = vpack.c.bf16 %v5557_v24, %v5553_v57  ;;  %v1892_v3 = vadd.f32 %v3929_v16, %v5419_v33  ;;  %v2091_v50 = vmax.f32 %v1881_v27, 0.0  ;;  %v6200_v33 = vcombine.high %v5497_v43, %v5502_v17 }
 0x199   :  { %2961 = vmatmul.mubr.bf16.gmra.mxu1 %v6198_v61  ;;  %v1883_v10 = vpop.f32.mrf.mxu0  ;;  %v2191_v31 = vmin.f32 %v6199_v1, 6.0  ;;  %v1809_v45 = vadd.f32 %v5411_v14, %v6201_v59  ;;  %v2075_v34 = vmax.f32 %v1817_v23, 0.0  ;;  %v3486_v12 = vcombine.low %v5497_v43, %v5502_v17 }
 0x19a   :  { %v2094_v32 = vmax.f32 %v1892_v3, 0.0  ;;  %v1884_v25 = vadd.f32 %v1883_v10, %v5448_v53  ;;  %3699 = vmatpush3.bf16.msra.mxu1 %v2348_v36  ;;  %2968 = vmatprep.mubr.bf16.mxu1 %v6200_v33  ;;  %v2304_v53 = vld [vmem:[%s6048_s3 + $0x1c8] sm:$0xff]  ;;  %v5590_v8 = vmin.f32 %v2093_v47, 6.0  ;;  %v2074_v6 = vmax.f32 %v1812_v48, 0.0  ;;  %v2249_v3 = vld [vmem:[%s6048_s3 + $0x10] sm:$0xff] }
 0x19b   :  { %3700 = vmatprep.subr.bf16.mxu1 %v2355_v15  ;;  %v5580_v39 = vpop.f32.mrf.mxu0  ;;  %v2347_v29 = vpack.c.bf16 %v2192_v11, %v2191_v31  ;;  %v1804_v19 = vadd.f32 %v5430_v30, %v6202_v41  ;;  %v2354_v21 = vpack.c.bf16 %v2206_v26, %v2205_v42  ;;  %v2204_v17 = vmin.f32 %v2076_v60, 6.0  ;;  %v2277_v41 = vld [vmem:[%s6048_s3 + $0xf0] sm:$0xff] }
 0x19c   :  { %v5592_v14 = vmin.f32 %v2094_v32, 6.0  ;;  %v2092_v49 = vmax.f32 %v1884_v25, 0.0  ;;  %v5598_v22 = vmin.f32 %v2091_v50, 6.0  ;;  %v3495_v20 = vcombine.high %v2304_v53, %v2308_v28 }
 0x19d   :  { %v5596_v43 = vpop.f32.mrf.mxu0  ;;  %v2073_v44 = vmax.f32 %v1809_v45, 0.0  ;;  %v1801_v62 = vadd.f32 %v5421_v40, %v6203_v4  ;;  %v2203_v27 = vmin.f32 %v2075_v34, 6.0  ;;  %v2202_v63 = vmin.f32 %v2074_v6, 6.0  ;;  %v2265_v34 = vld [vmem:[%s6048_s3 + $0x90] sm:$0xff]  ;;  %v6208_v4 = vld [vmem:[#allocation3_spill] sm:$0xff] }
 0x19e   :  { %v2362_v9 = vpack.c.bf16 %v5592_v14, %v5590_v8  ;;  %v5602_v46 = vmin.f32 %v2092_v49, 6.0  ;;  %3701 = vmatpush3.bf16.msra.mxu1 %v2347_v29  ;;  %v2072_v51 = vmax.f32 %v1804_v19, 0.0  ;;  %v6204_v16 = vpack.c.bf16 %v5366_v7, %v5364_v56  ;;  %v2273_v6 = vld [vmem:[%s6048_s3 + $0xd0] sm:$0xff] }
 0x19f   :  { %3702 = vmatprep.subr.bf16.mxu1 %v2354_v21  ;;  %v5606_v30 = vpop.f32.mrf.mxu0  ;;  %v2353_v23 = vpack.c.bf16 %v2204_v17, %v2203_v27  ;;  %v2201_v11 = vmin.f32 %v2073_v44, 6.0  ;;  %v2071_v40 = vmax.f32 %v1801_v62, 0.0  ;;  %v3494_v15 = vcombine.low %v2304_v53, %v2308_v28 }
 0x1a0   :  { %v2361_v36 = vpack.c.bf16 %v5602_v46, %v5598_v22  ;;  %v2200_v26 = vmin.f32 %v2072_v51, 6.0  ;;  %v6205_v56 = vpack.c.bf16 %v5378_v54, %v5374_v52  ;;  %v3441_v7 = vcombine.high %v2249_v3, %v2253_v35  ;;  %v2257_v52 = vld [vmem:[%s6048_s3 + $0x50] sm:$0xff]  ;;  %v2262_v22 = vld [vmem:[%s6048_s3 + $0x78] sm:$0xff] }
 0x1a1   :  { %2969 = vmatmul.mubr.bf16.gmra.mxu1 %v3486_v12  ;;  %v5610_v37 = vpop.f32.mrf.mxu0  ;;  %v2352_v48 = vpack.c.bf16 %v2202_v63, %v2201_v11  ;;  %v2199_v61 = vmin.f32 %v2071_v40, 6.0  ;;  %v6206_v50 = vpack.c.bf16 %v5316_v18, %v5314_v13  ;;  %v2261_v54 = vld [vmem:[%s6048_s3 + $0x70] sm:$0xff]  ;;  %v3440_v33 = vcombine.low %v2249_v3, %v2253_v35  ;;  %v6210_v11 = vld [vmem:[#allocation15_spill] sm:$0xff] }
 0x1a2   :  { %3703 = vmatpush3.bf16.msra.mxu1 %v6204_v16  ;;  %2976 = vmatprep.mubr.bf16.mxu1 %v3495_v20  ;;  %v6207_v59 = vpack.c.bf16 %v5327_v2, %v5323_v0  ;;  %v3449_v13 = vcombine.high %v2257_v52, %v2261_v54  ;;  %v2269_v12 = vld [vmem:[%s6048_s3 + $0xb0] sm:$0xff]  ;;  %v3448_v0 = vcombine.low %v2257_v52, %v2261_v54 }
 0x1a3   :  { %3704 = vmatprep.subr.bf16.mxu1 %v2353_v23  ;;  %v3936_v47 = vpop.f32.mrf.mxu0  ;;  %v2351_v1 = vpack.c.bf16 %v2200_v26, %v2199_v61  ;;  %v3457_v2 = vcombine.high %v2265_v34, %v2269_v12  ;;  %v3456_v21 = vcombine.low %v2265_v34, %v2269_v12  ;;  %v3465_v17 = vcombine.high %v2273_v6, %v2277_v41  ;;  %v2281_v63 = vld [vmem:[%s6048_s3 + $0x110] sm:$0xff]  ;;  %v6209_v23 = vld [vmem:[#allocation2_spill] sm:$0xff]  ;;  %v6212_v61 = vld [vmem:[#allocation7_spill] sm:$0xff] }
 0x1a4   :  { %v2285_v51 = vld [vmem:[%s6048_s3 + $0x130] sm:$0xff]  ;;  %v1921_v40 = vadd.f32 %v3936_v47, %v6210_v11  ;;  %v3464_v35 = vcombine.low %v2273_v6, %v2277_v41  ;;  %v6216_v41 = vld [vmem:[#allocation6_spill] sm:$0xff] }
 0x1a5   :  { %v5621_v60 = vpop.f32.mrf.mxu0  ;;  %v5681_v54 = vld [vmem:[%s6048_s3 + $0x150] sm:$0xff]  ;;  %v3472_v12 = vcombine.low %v2281_v63, %v2285_v51 }
 0x1a6   :  { %3705 = vmatpush3.bf16.msra.mxu1 %v6205_v56  ;;  %v5686_v47 = vld [vmem:[%s6048_s3 + $0x170] sm:$0xff] }
 0x1a7   :  { %3706 = vmatprep.subr.bf16.mxu1 %v2352_v48  ;;  %v3937_v10 = vpop.f32.mrf.mxu0  ;;  %v6211_v48 = vld [vmem:[#allocation5_spill] sm:$0xff] }
 0x1a8   :  { %v1924_v62 = vadd.f32 %v3937_v10, %v6208_v4 }
 0x1a9   :  { %2977 = vmatmul.mubr.bf16.gmra.mxu1 %v3494_v15  ;;  %v1915_v31 = vpop.f32.mrf.mxu0  ;;  %v3473_v15 = vcombine.high %v2281_v63, %v2285_v51 }
 0x1aa   :  { %3707 = vmatpush3.bf16.msra.mxu1 %v6206_v50  ;;  %3017 = vmatprep.mubr.bf16.mxu1 %v3441_v7  ;;  %v2102_v56 = vmax.f32 %v1924_v62, 0.0  ;;  %v1916_v10 = vadd.f32 %v1915_v31, %v6212_v61  ;;  %v6213_v50 = vld [vmem:[#allocation19_spill] sm:$0xff]  ;;  %v6215_v31 = vld [vmem:[#allocation21_spill] sm:$0xff] }
 0x1ab   :  { %3708 = vmatprep.subr.bf16.mxu1 %v2351_v1  ;;  %v5629_v32 = vpop.f32.mrf.mxu0 }
 0x1ac   :  { %v2230_v62 = vmin.f32 %v2102_v56, 6.0 }
 0x1ad   :  { %v5637_v25 = vpop.f32.mrf.mxu0 }
 0x1ae   :  { %3709 = vmatpush3.bf16.msra.mxu1 %v6207_v59  ;;  %v6214_v59 = vld [vmem:[#allocation9_spill] sm:$0xff] }
 0x1af   :  { %v5642_v18 = vpop.f32.mrf.mxu0 }
 0x1b1   :  { %3018 = vmatmul.mubr.bf16.vlgmr.msra.gmra.mxu1 %v3440_v33  ;;  %v5644_v45 = vpop.f32.mrf.mxu0  ;;  %v2101_v33 = vmax.f32 %v1921_v40, 0.0  ;;  %v6219_v40 = vld [vmem:[#allocation10_spill] sm:$0xff] }
 0x1b2   :  { %3025 = vmatprep.mubr.bf16.mxu1 %v3449_v13 }
 0x1b3   :  { %v5646_v42 = vpop.f32.mrf.mxu0 }
 0x1b5   :  { %v5654_v53 = vpop.f32.mrf.mxu0 }
 0x1b7   :  { %v5656_v28 = vpop.f32.mrf.mxu0 }
 0x1b9   :  { %3026 = vmatmul.mubr.bf16.gmra.mxu1 %v3448_v0  ;;  %v5658_v29 = vpop.f32.mrf.mxu0  ;;  %v1913_v0 = vadd.f32 %v5621_v60, %v6215_v31  ;;  %v1905_v60 = vadd.f32 %v5580_v39, %v6219_v40  ;;  %v6223_v39 = vld [vmem:[#allocation16_spill] sm:$0xff] }
 0x1ba   :  { %3033 = vmatprep.mubr.bf16.mxu1 %v3457_v2 }
 0x1bb   :  { %v3948_v49 = vpop.f32.mrf.mxu0 }
 0x1bd   :  { %v1960_v19 = vpop.f32.mrf.mxu0 }
 0x1bf   :  { %v3949_v20 = vpop.f32.mrf.mxu0 }
 0x1c0   :  { %v1972_v13 = vadd.f32 %v3949_v20, %v6214_v59  ;;  %v3481_v20 = vcombine.high %v5681_v54, %v5686_v47  ;;  %v6222_v59 = vld [vmem:[#allocation20_spill] sm:$0xff] }
 0x1c1   :  { %3034 = vmatmul.mubr.bf16.gmra.mxu1 %v3456_v21  ;;  %v1963_v44 = vpop.f32.mrf.mxu0 }
 0x1c2   :  { %3041 = vmatprep.mubr.bf16.mxu1 %v3465_v17  ;;  %v6217_v17 = vld [vmem:[#allocation4_spill] sm:$0xff] }
 0x1c3   :  { %v3952_v27 = vpop.f32.mrf.mxu0  ;;  %v1908_v4 = vadd.f32 %v5606_v30, %v6217_v17 }
 0x1c4   :  { %v1985_v16 = vadd.f32 %v3952_v27, %v6209_v23  ;;  %v6218_v27 = vld [vmem:[#allocation14_spill] sm:$0xff] }
 0x1c5   :  { %v1976_v3 = vpop.f32.mrf.mxu0  ;;  %v1969_v23 = vadd.f32 %v3948_v49, %v6218_v27  ;;  %v2098_v61 = vmax.f32 %v1908_v4, 0.0  ;;  %v3480_v27 = vcombine.low %v5681_v54, %v5686_v47 }
 0x1c6   :  { %v1977_v26 = vadd.f32 %v1976_v3, %v6211_v48  ;;  %v2117_v1 = vmax.f32 %v1985_v16, 0.0  ;;  %v2100_v16 = vmax.f32 %v1916_v10, 0.0  ;;  %v2229_v3 = vmin.f32 %v2101_v33, 6.0  ;;  %v6220_v48 = vld [vmem:[#allocation12_spill] sm:$0xff] }
 0x1c7   :  { %v3953_v7 = vpop.f32.mrf.mxu0  ;;  %v2113_v49 = vmax.f32 %v1969_v23, 0.0  ;;  %v1900_v10 = vadd.f32 %v5610_v37, %v6222_v59  ;;  %v1956_v33 = vadd.f32 %v5656_v28, %v6223_v39  ;;  %v2297_v28 = vld [vmem:[%s6048_s3 + $0x190] sm:$0xff]  ;;  %v2226_v4 = vmin.f32 %v2098_v61, 6.0  ;;  %v6229_v61 = vld [vmem:[#allocation23_spill] sm:$0xff] }
 0x1c8   :  { %v1988_v52 = vadd.f32 %v3953_v7, %v6213_v50  ;;  %v2115_v2 = vmax.f32 %v1977_v26, 0.0  ;;  %v2245_v11 = vmin.f32 %v2117_v1, 6.0  ;;  %v1964_v26 = vadd.f32 %v1963_v44, %v6220_v48  ;;  %v6221_v50 = vld [vmem:[#allocation11_spill] sm:$0xff] }
 0x1c9   :  { %3042 = vmatmul.mubr.bf16.gmra.mxu1 %v3464_v35  ;;  %v1979_v34 = vpop.f32.mrf.mxu0  ;;  %v2114_v35 = vmax.f32 %v1972_v13, 0.0  ;;  %v2366_v1 = vpack.c.bf16 %v2230_v62, %v2229_v3  ;;  %v2096_v62 = vmax.f32 %v1900_v10, 0.0  ;;  %v2110_v23 = vmax.f32 %v1956_v33, 0.0  ;;  %v6227_v3 = vld [vmem:[#allocation17_spill] sm:$0xff] }
 0x1ca   :  { %v2118_v6 = vmax.f32 %v1988_v52, 0.0  ;;  %v1980_v21 = vadd.f32 %v1979_v34, %v6216_v41  ;;  %3049 = vmatprep.mubr.bf16.mxu1 %v3473_v15  ;;  %v2099_v15 = vmax.f32 %v1913_v0, 0.0  ;;  %v2243_v7 = vmin.f32 %v2115_v2, 6.0  ;;  %v6224_v2 = vld [vmem:[#allocation8_spill] sm:$0xff] }
 0x1cb   :  { %v1961_v52 = vadd.f32 %v1960_v19, %v6221_v50  ;;  %v2228_v34 = vmin.f32 %v2100_v16, 6.0  ;;  %v2242_v13 = vmin.f32 %v2114_v35, 6.0  ;;  %v2112_v44 = vmax.f32 %v1964_v26, 0.0  ;;  %v6225_v19 = vld [vmem:[#allocation13_spill] sm:$0xff] }
 0x1cc   :  { %v2246_v63 = vmin.f32 %v2118_v6, 6.0  ;;  %v2116_v51 = vmax.f32 %v1980_v21, 0.0  ;;  %v2097_v0 = vmax.f32 %v1905_v60, 0.0  ;;  %v1897_v6 = vadd.f32 %v5596_v43, %v6224_v2 }
 0x1cd   :  { %v2227_v41 = vmin.f32 %v2099_v15, 6.0  ;;  %v1953_v37 = vadd.f32 %v5646_v42, %v6225_v19  ;;  %v2241_v21 = vmin.f32 %v2113_v49, 6.0  ;;  %v2111_v17 = vmax.f32 %v1961_v52, 0.0 }
 0x1ce   :  { %v2374_v30 = vpack.c.bf16 %v2246_v63, %v2245_v11  ;;  %v2244_v56 = vmin.f32 %v2116_v51, 6.0  ;;  %v2240_v11 = vmin.f32 %v2112_v44, 6.0  ;;  %v2225_v63 = vmin.f32 %v2097_v0, 6.0  ;;  %v6231_v44 = vld [vmem:[#allocation26_spill] sm:$0xff] }
 0x1cf   :  { %v2365_v43 = vpack.c.bf16 %v2228_v34, %v2227_v41  ;;  %v2372_v16 = vpack.c.bf16 %v2242_v13, %v2241_v21  ;;  %v2095_v51 = vmax.f32 %v1897_v6, 0.0  ;;  %v2109_v60 = vmax.f32 %v1953_v37, 0.0  ;;  %v6230_v34 = vld [vmem:[#allocation27_spill] sm:$0xff]  ;;  %v2250_v21 = vld [vmem:[%s6048_s3 + $0x18] sm:$0xff] }
 0x1d0   :  { %v2373_v31 = vpack.c.bf16 %v2244_v56, %v2243_v7  ;;  %3758 = vmatprep.subr.bf16.mxu1 %v2374_v30  ;;  %v1945_v35 = vadd.f32 %v5654_v53, %v6227_v3  ;;  %v2239_v48 = vmin.f32 %v2111_v17, 6.0  ;;  %v2364_v26 = vpack.c.bf16 %v2226_v4, %v2225_v63  ;;  %v6228_v7 = vld [vmem:[#allocation25_spill] sm:$0xff]  ;;  %v2305_v53 = vld [vmem:[%s6048_s3 + $0x1d0] sm:$0xff] }
 0x1d1   :  { %3050 = vmatmul.mubr.bf16.gmra.mxu1 %v3472_v12  ;;  %v2301_v12 = vld [vmem:[%s6048_s3 + $0x1b0] sm:$0xff]  ;;  %v2224_v15 = vmin.f32 %v2096_v62, 6.0  ;;  %v1940_v54 = vadd.f32 %v5642_v18, %v6228_v7  ;;  %v2238_v47 = vmin.f32 %v2110_v23, 6.0  ;;  %v2223_v56 = vmin.f32 %v2095_v51, 6.0  ;;  %v2258_v4 = vld [vmem:[%s6048_s3 + $0x58] sm:$0xff] }
 0x1d2   :  { %3759 = vmatpush3.bf16.msra.mxu1 %v2366_v1  ;;  %3057 = vmatprep.mubr.bf16.mxu1 %v3481_v20  ;;  %v6226_v20 = vld [vmem:[#allocation22_spill] sm:$0xff]  ;;  %v3489_v40 = vcombine.high %v2297_v28, %v2301_v12  ;;  %v1937_v49 = vadd.f32 %v5629_v32, %v6229_v61  ;;  %v2237_v50 = vmin.f32 %v2109_v60, 6.0  ;;  %v2107_v52 = vmax.f32 %v1945_v35, 0.0  ;;  %v2309_v18 = vld [vmem:[%s6048_s3 + $0x1f0] sm:$0xff]  ;;  %v2286_v7 = vld [vmem:[%s6048_s3 + $0x138] sm:$0xff] }
 0x1d3   :  { %3760 = vmatprep.subr.bf16.mxu1 %v2373_v31  ;;  %v1948_v42 = vadd.f32 %v5658_v29, %v6226_v20  ;;  %v2371_v29 = vpack.c.bf16 %v2240_v11, %v2239_v48  ;;  %v2363_v59 = vpack.c.bf16 %v2224_v15, %v2223_v56  ;;  %v3488_v10 = vcombine.low %v2297_v28, %v2301_v12  ;;  %v2278_v11 = vld [vmem:[%s6048_s3 + $0xf8] sm:$0xff] }
 0x1d4   :  { %v2106_v1 = vmax.f32 %v1940_v54, 0.0  ;;  %v1932_v31 = vadd.f32 %v5644_v45, %v6230_v34  ;;  %v2370_v39 = vpack.c.bf16 %v2238_v47, %v2237_v50  ;;  %v3497_v32 = vcombine.high %v2305_v53, %v2309_v18  ;;  %v2282_v15 = vld [vmem:[%s6048_s3 + $0x118] sm:$0xff] }
 0x1d5   :  { %v2108_v30 = vmax.f32 %v1948_v42, 0.0  ;;  %v2105_v13 = vmax.f32 %v1937_v49, 0.0  ;;  %v1929_v0 = vadd.f32 %v5637_v25, %v6231_v44  ;;  %v2235_v2 = vmin.f32 %v2107_v52, 6.0  ;;  %v2254_v25 = vld [vmem:[%s6048_s3 + $0x38] sm:$0xff] }
 0x1d6   :  { %3761 = vmatpush3.bf16.msra.mxu1 %v2365_v43  ;;  %v2234_v6 = vmin.f32 %v2106_v1, 6.0  ;;  %v2104_v41 = vmax.f32 %v1932_v31, 0.0  ;;  %v3496_v12 = vcombine.low %v2305_v53, %v2309_v18  ;;  %v3443_v8 = vcombine.high %v2250_v21, %v2254_v25  ;;  %v2290_v52 = vld [vmem:[%s6048_s3 + $0x158] sm:$0xff] }
 0x1d7   :  { %3762 = vmatprep.subr.bf16.mxu1 %v2372_v16  ;;  %v2236_v33 = vmin.f32 %v2108_v30, 6.0  ;;  %v2233_v45 = vmin.f32 %v2105_v13, 6.0  ;;  %v2103_v37 = vmax.f32 %v1929_v0, 0.0  ;;  %v3442_v46 = vcombine.low %v2250_v21, %v2254_v25  ;;  %v2274_v16 = vld [vmem:[%s6048_s3 + $0xd8] sm:$0xff] }
 0x1d8   :  { %v2232_v28 = vmin.f32 %v2104_v41, 6.0  ;;  %v3450_v23 = vcombine.low %v2258_v4, %v2262_v22  ;;  %v3467_v60 = vcombine.high %v2274_v16, %v2278_v11  ;;  %v3466_v30 = vcombine.low %v2274_v16, %v2278_v11  ;;  %v2294_v53 = vld [vmem:[%s6048_s3 + $0x178] sm:$0xff]  ;;  %v5829_v16 = vpop.permute.xlu1 %2398 }
 0x1d9   :  { %3058 = vmatmul.mubr.bf16.gmra.mxu1 %v3480_v27  ;;  %v2369_v19 = vpack.c.bf16 %v2236_v33, %v2235_v2  ;;  %v2368_v17 = vpack.c.bf16 %v2234_v6, %v2233_v45  ;;  %v2231_v14 = vmin.f32 %v2103_v37, 6.0  ;;  %v3483_v1 = vcombine.high %v2290_v52, %v2294_v53  ;;  %v2302_v13 = vld [vmem:[%s6048_s3 + $0x1b8] sm:$0xff] }
 0x1da   :  { %3763 = vmatpush3.bf16.msra.mxu1 %v2364_v26  ;;  %3065 = vmatprep.mubr.bf16.mxu1 %v3489_v40  ;;  %v3482_v2 = vcombine.low %v2290_v52, %v2294_v53  ;;  %v2306_v21 = vld [vmem:[%s6048_s3 + $0x1d8] sm:$0xff] }
 0x1db   :  { %3764 = vmatprep.subr.bf16.mxu1 %v2371_v29  ;;  %v3475_v29 = vcombine.high %v2282_v15, %v2286_v7  ;;  %v2310_v25 = vld [vmem:[%s6048_s3 + $0x1f8] sm:$0xff] }
 0x1de   :  { %3765 = vmatpush3.bf16.msra.mxu1 %v2363_v59 }
 0x1df   :  { %3766 = vmatprep.subr.bf16.mxu1 %v2370_v39 }
 0x1e1   :  { %3066 = vmatmul.mubr.bf16.gmra.mxu1 %v3488_v10  ;;  %v3474_v10 = vcombine.low %v2282_v15, %v2286_v7  ;;  %v2409_v15 = vpop.permute.xlu1 %2408 }
 0x1e2   :  { %3767 = vmatpush3.bf16.msra.mxu1 %v2362_v9  ;;  %3073 = vmatprep.mubr.bf16.mxu1 %v3497_v32  ;;  %v2367_v9 = vpack.c.bf16 %v2232_v28, %v2231_v14  ;;  %v2298_v32 = vld [vmem:[%s6048_s3 + $0x198] sm:$0xff] }
 0x1e3   :  { %3768 = vmatprep.subr.bf16.mxu1 %v2369_v19  ;;  %v3491_v6 = vcombine.high %v2298_v32, %v2302_v13 }
 0x1e6   :  { %3769 = vmatpush3.bf16.msra.mxu1 %v2361_v36  ;;  %v3451_v36 = vcombine.high %v2258_v4, %v2262_v22 }
 0x1e7   :  { %3770 = vmatprep.subr.bf16.mxu1 %v2368_v17 }
 0x1e9   :  { %3074 = vmatmul.mubr.bf16.gmra.mxu1 %v3496_v12  ;;  %v3490_v12 = vcombine.low %v2298_v32, %v2302_v13 }
 0x1ea   :  { %3771 = vmatpush3.bf16.msra.mxu1 %v2360_v5  ;;  %3114 = vmatprep.mubr.bf16.mxu1 %v3443_v8  ;;  %v2270_v5 = vld [vmem:[%s6048_s3 + $0xb8] sm:$0xff]  ;;  %v3499_v8 = vcombine.high %v2306_v21, %v2310_v25 }
 0x1eb   :  { %3772 = vmatprep.subr.bf16.mxu1 %v2367_v9  ;;  %v3459_v20 = vcombine.high %v2266_v38, %v2270_v5  ;;  %v3458_v40 = vcombine.low %v2266_v38, %v2270_v5 }
 0x1ee   :  { %3773 = vmatpush3.bf16.msra.mxu1 %v2359_v55 }
 0x1f0   :  { %v3588_v62 = vpop.f32.mrf.mxu1 }
 0x1f1   :  { %3115 = vmatmul.mubr.bf16.vlgmr.msra.gmra.mxu1 %v3442_v46 }
 0x1f2   :  { %3122 = vmatprep.mubr.bf16.mxu1 %v3451_v36  ;;  %v3589_v58 = vpop.f32.mrf.mxu1 }
 0x1f3   :  { %v5765_v43 = vadd.f32 %v3589_v58, %v3588_v62  ;;  %v3498_v62 = vcombine.low %v2306_v21, %v2310_v25 }
 0x1f4   :  { %v3591_v27 = vpop.f32.mrf.mxu1 }
 0x1f6   :  { %v3592_v57 = vpop.f32.mrf.mxu1 }
 0x1f7   :  { %v5767_v24 = vadd.f32 %v3592_v57, %v3591_v27 }
 0x1f8   :  { %v3594_v55 = vpop.f32.mrf.mxu1 }
 0x1f9   :  { %3123 = vmatmul.mubr.bf16.gmra.mxu1 %v3450_v23 }
 0x1fa   :  { %3130 = vmatprep.mubr.bf16.mxu1 %v3459_v20  ;;  %v3595_v42 = vpop.f32.mrf.mxu1  ;;  %v5825_v20 = vpop.permute.xlu0 %2393 }
 0x1fb   :  { %v5775_v63 = vadd.f32 %v3595_v42, %v3594_v55 }
 0x1fc   :  { %v3597_v51 = vpop.f32.mrf.mxu1 }
 0x1fe   :  { %v3598_v3 = vpop.f32.mrf.mxu1 }
 0x1ff   :  { %v5777_v35 = vadd.f32 %v3598_v3, %v3597_v51  ;;  %v2404_v51 = vpop.permute.xlu0 %2403 }
 0x200   :  { %v3600_v48 = vpop.f32.mrf.mxu1 }
 0x201   :  { %3131 = vmatmul.mubr.bf16.gmra.mxu1 %v3458_v40 }
 0x202   :  { %3138 = vmatprep.mubr.bf16.mxu1 %v3467_v60  ;;  %v3601_v26 = vpop.f32.mrf.mxu1  ;;  %v2834_v60 = vadd.f32 %v5765_v43, %v2404_v51  ;;  %v2419_v43 = vpop.permute.xlu1 %2418 }
 0x203   :  { %v5785_v54 = vadd.f32 %v3601_v26, %v3600_v48 }
 0x204   :  { %v3603_v47 = vpop.f32.mrf.mxu1 }
 0x206   :  { %v3604_v56 = vpop.f32.mrf.mxu1 }
 0x207   :  { %v5787_v61 = vadd.f32 %v3604_v56, %v3603_v47  ;;  %v2837_v47 = vadd.f32 %v5767_v24, %v2409_v15 }
 0x209   :  { %v3606_v49 = vpop.f32.mrf.mxu1  ;;  %3139 = vmatmul.mubr.bf16.gmra.mxu1 %v3466_v30 }
 0x20a   :  { %3146 = vmatprep.mubr.bf16.mxu1 %v3475_v29 }
 0x20b   :  { %v3607_v50 = vpop.f32.mrf.mxu1 }
 0x20c   :  { %v5795_v18 = vadd.f32 %v3607_v50, %v3606_v49  ;;  %v2414_v49 = vpop.permute.xlu0 %2413 }
 0x20d   :  { %v3609_v59 = vpop.f32.mrf.mxu1  ;;  %v2842_v52 = vadd.f32 %v5775_v63, %v2414_v49  ;;  %v2429_v63 = vpop.permute.xlu1 %2428 }
 0x20f   :  { %v3610_v34 = vpop.f32.mrf.mxu1 }
 0x210   :  { %v5797_v31 = vadd.f32 %v3610_v34, %v3609_v59  ;;  %v2845_v34 = vadd.f32 %v5777_v35, %v2419_v43  ;;  %v2424_v24 = vpop.permute.xlu0 %2423 }
 0x211   :  { %v3612_v39 = vpop.f32.mrf.mxu1  ;;  %3147 = vmatmul.mubr.bf16.gmra.mxu1 %v3474_v10 }
 0x212   :  { %3154 = vmatprep.mubr.bf16.mxu1 %v3483_v1 }
 0x213   :  { %v3613_v33 = vpop.f32.mrf.mxu1 }
 0x214   :  { %v5805_v44 = vadd.f32 %v3613_v33, %v3612_v39  ;;  %v2434_v35 = vpop.permute.xlu0 %2433 }
 0x215   :  { %v3615_v0 = vpop.f32.mrf.mxu1 }
 0x217   :  { %v3616_v41 = vpop.f32.mrf.mxu1 }
 0x218   :  { %v5807_v19 = vadd.f32 %v3616_v41, %v3615_v0  ;;  %v2850_v0 = vadd.f32 %v5785_v54, %v2424_v24  ;;  %v2439_v54 = vpop.permute.xlu1 %2438 }
 0x219   :  { %v3618_v45 = vpop.f32.mrf.mxu1  ;;  %3155 = vmatmul.mubr.bf16.gmra.mxu1 %v3482_v2 }
 0x21a   :  { %3162 = vmatprep.mubr.bf16.mxu1 %v3491_v6 }
 0x21b   :  { %v3619_v37 = vpop.f32.mrf.mxu1 }
 0x21c   :  { %v5815_v17 = vadd.f32 %v3619_v37, %v3618_v45  ;;  %v2853_v37 = vadd.f32 %v5787_v61, %v2429_v63  ;;  %v2444_v61 = vpop.permute.xlu0 %2443 }
 0x21d   :  { %v3621_v28 = vpop.f32.mrf.mxu1 }
 0x21f   :  { %v3622_v14 = vpop.f32.mrf.mxu1 }
 0x220   :  { %v5817_v9 = vadd.f32 %v3622_v14, %v3621_v28 }
 0x221   :  { %v3624_v4 = vpop.f32.mrf.mxu1  ;;  %3163 = vmatmul.mubr.bf16.gmra.mxu1 %v3490_v12 }
 0x222   :  { %3170 = vmatprep.mubr.bf16.mxu1 %v3499_v8  ;;  %v2858_v8 = vadd.f32 %v5795_v18, %v2434_v35  ;;  %v2449_v18 = vpop.permute.xlu1 %2448 }
 0x223   :  { %v3625_v22 = vpop.f32.mrf.mxu1 }
 0x224   :  { %v5819_v46 = vadd.f32 %v3625_v22, %v3624_v4 }
 0x225   :  { %v3627_v36 = vpop.f32.mrf.mxu1 }
 0x227   :  { %v3628_v58 = vpop.f32.mrf.mxu1 }
 0x228   :  { %v5821_v38 = vadd.f32 %v3628_v58, %v3627_v36 }
 0x229   :  { %3171 = vmatmul.mubr.bf16.gmra.mxu1 %v3498_v62  ;;  %v2861_v62 = vadd.f32 %v5797_v31, %v2439_v54 }
 0x231   :  { %v3646_v5 = vpop.f32.mrf.mxu1 }
 0x233   :  { %v3647_v27 = vpop.f32.mrf.mxu1 }
 0x234   :  { %v5823_v23 = vadd.f32 %v3647_v27, %v3646_v5 }
 0x235   :  { %v3649_v57 = vpop.f32.mrf.mxu1 }
 0x237   :  { %v3650_v55 = vpop.f32.mrf.mxu1 }
 0x238   :  { %v5827_v42 = vadd.f32 %v3650_v55, %v3649_v57  ;;  %v2866_v55 = vadd.f32 %v5805_v44, %v2444_v61  ;;  %v2459_v44 = vpop.permute.xlu1 %2458 }
 0x239   :  { %v3652_v11 = vpop.f32.mrf.mxu1  ;;  %v2877_v43 = vadd.f32 %v5817_v9, %v2459_v44 }
 0x23b   :  { %v3653_v40 = vpop.f32.mrf.mxu1 }
 0x23c   :  { %v3654_v3 = vadd.f32 %v3653_v40, %v3652_v11 }
 0x23d   :  { %v3655_v48 = vpop.f32.mrf.mxu1 }
 0x23e   :  { %v5832_v26 = vadd.f32 %v3654_v3, %v2834_v60  ;;  %v2869_v3 = vadd.f32 %v5807_v19, %v2449_v18 }
 0x23f   :  { %v3656_v7 = vpop.f32.mrf.mxu1 }
 0x240   :  { %v3657_v30 = vadd.f32 %v3656_v7, %v3655_v48  ;;  %v2454_v7 = vpop.permute.xlu0 %2453 }
 0x241   :  { %v3658_v29 = vpop.f32.mrf.mxu1 }
 0x242   :  { %v5835_v56 = vadd.f32 %v3657_v30, %v2837_v47  ;;  %v3582_v47 = vpop.f32.mrf.mxu0 }
 0x243   :  { %v3659_v50 = vpop.f32.mrf.mxu1 }
 0x244   :  { %v3660_v53 = vadd.f32 %v3659_v50, %v3658_v29  ;;  %v2874_v29 = vadd.f32 %v5815_v17, %v2454_v7 }
 0x245   :  { %v3661_v59 = vpop.f32.mrf.mxu1 }
 0x246   :  { %v5838_v10 = vadd.f32 %v3660_v53, %v2842_v52  ;;  %v3583_v53 = vpop.f32.mrf.mxu0 }
 0x247   :  { %v3662_v1 = vpop.f32.mrf.mxu1 }
 0x248   :  { %v3663_v39 = vadd.f32 %v3662_v1, %v3661_v59 }
 0x249   :  { %v3664_v33 = vpop.f32.mrf.mxu1 }
 0x24a   :  { %v5841_v32 = vadd.f32 %v3663_v39, %v2845_v34  ;;  %v2464_v34 = vpop.permute.xlu0 %2463 }
 0x24b   :  { %v3665_v13 = vpop.f32.mrf.mxu1 }
 0x24c   :  { %v3666_v2 = vadd.f32 %v3665_v13, %v3664_v33  ;;  %v3585_v33 = vpop.f32.mrf.mxu0  ;;  %v2882_v13 = vadd.f32 %v5819_v46, %v2464_v34 }
 0x24d   :  { %v3667_v6 = vpop.f32.mrf.mxu1 }
 0x24e   :  { %v5844_v41 = vadd.f32 %v3666_v2, %v2850_v0  ;;  %v2469_v2 = vpop.permute.xlu1 %2468 }
 0x24f   :  { %v3668_v45 = vpop.f32.mrf.mxu1 }
 0x250   :  { %v3669_v21 = vadd.f32 %v3668_v45, %v3667_v6  ;;  %v3584_v6 = vadd.f32 %v3583_v53, %v3582_v47  ;;  %v3586_v45 = vpop.f32.mrf.mxu0 }
 0x251   :  { %v3670_v25 = vpop.f32.mrf.mxu1 }
 0x252   :  { %v5847_v28 = vadd.f32 %v3669_v21, %v2853_v37  ;;  %v2885_v21 = vadd.f32 %v5821_v38, %v2469_v2  ;;  %v2826_v35 = vadd.f32 %v3584_v6, %v5825_v20 }
 0x253   :  { %v3671_v12 = vpop.f32.mrf.mxu1 }
 0x254   :  { %v3672_v14 = vadd.f32 %v3671_v12, %v3670_v25  ;;  %v3587_v12 = vadd.f32 %v3586_v45, %v3585_v33  ;;  %v2923_v46 = vadd.f32 %v5823_v23, %v2826_v35 }
 0x255   :  { %v3673_v4 = vpop.f32.mrf.mxu1 }
 0x256   :  { %v5850_v22 = vadd.f32 %v3672_v14, %v2858_v8 }
 0x257   :  { %v3674_v36 = vpop.f32.mrf.mxu1 }
 0x258   :  { %v3675_v58 = vadd.f32 %v3674_v36, %v3673_v4  ;;  %v2829_v36 = vadd.f32 %v3587_v12, %v5829_v16 }
 0x259   :  { %v3676_v5 = vpop.f32.mrf.mxu1 }
 0x25a   :  { %v5853_v27 = vadd.f32 %v3675_v58, %v2861_v62 }
 0x25b   :  { %v3677_v57 = vpop.f32.mrf.mxu1 }
 0x25c   :  { %v3678_v11 = vadd.f32 %v3677_v57, %v3676_v5  ;;  %v2926_v5 = vadd.f32 %v5827_v42, %v2829_v36 }
 0x25d   :  { %v3679_v51 = vpop.f32.mrf.mxu1 }
 0x25e   :  { %v5856_v40 = vadd.f32 %v3678_v11, %v2866_v55 }
 0x25f   :  { %v3680_v60 = vpop.f32.mrf.mxu1 }
 0x260   :  { %v3681_v48 = vadd.f32 %v3680_v60, %v3679_v51 }
 0x261   :  { %v3682_v15 = vpop.f32.mrf.mxu1 }
 0x262   :  { %v5859_v31 = vadd.f32 %v3681_v48, %v2869_v3 }
 0x263   :  { %v3683_v30 = vpop.f32.mrf.mxu1 }
 0x264   :  { %v3684_v49 = vadd.f32 %v3683_v30, %v3682_v15 }
 0x265   :  { %v3685_v50 = vpop.f32.mrf.mxu1 }
 0x266   :  { %v5862_v52 = vadd.f32 %v3684_v49, %v2874_v29 }
 0x267   :  { %v3686_v59 = vpop.f32.mrf.mxu1 }
 0x268   :  { %v3687_v1 = vadd.f32 %v3686_v59, %v3685_v50 }
 0x269   :  { %v3688_v19 = vpop.f32.mrf.mxu1 }
 0x26a   :  { %v5865_v39 = vadd.f32 %v3687_v1, %v2877_v43 }
 0x26b   :  { %v3689_v24 = vpop.f32.mrf.mxu1 }
 0x26c   :  { %v3690_v0 = vadd.f32 %v3689_v24, %v3688_v19 }
 0x26d   :  { %v3691_v17 = vpop.f32.mrf.mxu1 }
 0x26e   :  { %v5868_v63 = vadd.f32 %v3690_v0, %v2882_v13 }
 0x26f   :  { %v3692_v37 = vpop.f32.mrf.mxu1 }
 0x270   :  { %v3693_v9 = vadd.f32 %v3692_v37, %v3691_v17 }
 0x271   :  { %v3710_v25 = vpop.f32.mrf.mxu1 }
 0x272   :  { %v5872_v8 = vadd.f32 %v3693_v9, %v2885_v21 }
 0x273   :  { %v3711_v14 = vpop.f32.mrf.mxu1 }
 0x274   :  { %v3712_v4 = vadd.f32 %v3711_v14, %v3710_v25 }
 0x275   :  { %v3713_v54 = vpop.f32.mrf.mxu1 }
 0x276   :  { %v5876_v62 = vadd.f32 %v3712_v4, %v2923_v46 }
 0x277   :  { %v3714_v58 = vpop.f32.mrf.mxu1 }
 0x278   :  { %v3715_v38 = vadd.f32 %v3714_v58, %v3713_v54 }
 0x279   :  { %v3716_v61 = vpop.f32.mrf.mxu1 }
 0x27a   :  { %v5879_v57 = vadd.f32 %v3715_v38, %v2926_v5 }
 0x27b   :  { %v3717_v20 = vpop.f32.mrf.mxu1 }
 0x27c   :  { %v3718_v55 = vadd.f32 %v3717_v20, %v3716_v61 }
 0x27d   :  { %v3719_v11 = vpop.f32.mrf.mxu1 }
 0x27e   :  { %v5882_v51 = vadd.f32 %v3718_v55, %v5832_v26 }
 0x27f   :  { %v3720_v23 = vpop.f32.mrf.mxu1 }
 0x280   :  { %v3721_v18 = vadd.f32 %v3720_v23, %v3719_v11 }
 0x281   :  { %v3722_v60 = vpop.f32.mrf.mxu1 }
 0x282   :  { %v5885_v16 = vadd.f32 %v3721_v18, %v5835_v56 }
 0x283   :  { %v3723_v3 = vpop.f32.mrf.mxu1 }
 0x284   :  { %v3724_v48 = vadd.f32 %v3723_v3, %v3722_v60 }
 0x285   :  { %v3725_v15 = vpop.f32.mrf.mxu1 }
 0x286   :  { %v3036_v42 = vadd.f32 %v3724_v48, %v5838_v10 }
 0x287   :  { %v3726_v7 = vpop.f32.mrf.mxu1 }
 0x288   :  { %v3727_v47 = vadd.f32 %v3726_v7, %v3725_v15 }
 0x289   :  { %v3728_v30 = vpop.f32.mrf.mxu1 }
 0x28a   :  { %v3039_v29 = vadd.f32 %v3727_v47, %v5841_v32 }
 0x28b   :  { %v3729_v49 = vpop.f32.mrf.mxu1 }
 0x28c   :  { %v3730_v50 = vadd.f32 %v3729_v49, %v3728_v30 }
 0x28d   :  { %v3731_v26 = vpop.f32.mrf.mxu1 }
 0x28e   :  { %v5890_v44 = vadd.f32 %v3730_v50, %v5844_v41 }
 0x28f   :  { %v3732_v53 = vpop.f32.mrf.mxu1 }
 0x290   :  { %v3733_v59 = vadd.f32 %v3732_v53, %v3731_v26 }
 0x291   :  { %v3734_v56 = vpop.f32.mrf.mxu1 }
 0x292   :  { %v5893_v43 = vadd.f32 %v3733_v59, %v5847_v28 }
 0x293   :  { %v3735_v1 = vpop.f32.mrf.mxu1 }
 0x294   :  { %v3736_v19 = vadd.f32 %v3735_v1, %v3734_v56 }
 0x295   :  { %v3737_v10 = vpop.f32.mrf.mxu1 }
 0x296   :  { %v5896_v34 = vadd.f32 %v3736_v19, %v5850_v22 }
 0x297   :  { %v3738_v33 = vpop.f32.mrf.mxu1 }
 0x298   :  { %v3739_v32 = vadd.f32 %v3738_v33, %v3737_v10 }
 0x299   :  { %v3740_v24 = vpop.f32.mrf.mxu1 }
 0x29a   :  { %v5899_v13 = vadd.f32 %v3739_v32, %v5853_v27 }
 0x29b   :  { %v3741_v41 = vpop.f32.mrf.mxu1 }
 0x29c   :  { %v3742_v0 = vadd.f32 %v3741_v41, %v3740_v24 }
 0x29d   :  { %v3743_v17 = vpop.f32.mrf.mxu1 }
 0x29e   :  { %v5902_v2 = vadd.f32 %v3742_v0, %v5856_v40 }
 0x29f   :  { %v3744_v28 = vpop.f32.mrf.mxu1 }
 0x2a0   :  { %v3745_v6 = vadd.f32 %v3744_v28, %v3743_v17 }
 0x2a1   :  { %v3746_v45 = vpop.f32.mrf.mxu1 }
 0x2a2   :  { %v5905_v37 = vadd.f32 %v3745_v6, %v5859_v31 }
 0x2a3   :  { %v3747_v22 = vpop.f32.mrf.mxu1 }
 0x2a4   :  { %v3748_v21 = vadd.f32 %v3747_v22, %v3746_v45 }
 0x2a5   :  { %v3749_v9 = vpop.f32.mrf.mxu1 }
 0x2a6   :  { %v5908_v25 = vadd.f32 %v3748_v21, %v5862_v52 }
 0x2a7   :  { %v3750_v27 = vpop.f32.mrf.mxu1 }
 0x2a8   :  { %v3751_v35 = vadd.f32 %v3750_v27, %v3749_v9 }
 0x2a9   :  { %v3752_v12 = vpop.f32.mrf.mxu1 }
 0x2aa   :  { %v5911_v14 = vadd.f32 %v3751_v35, %v5865_v39 }
 0x2ab   :  { %v3753_v40 = vpop.f32.mrf.mxu1 }
 0x2ac   :  { %v3754_v46 = vadd.f32 %v3753_v40, %v3752_v12 }
 0x2ad   :  { %v3755_v4 = vpop.f32.mrf.mxu1 }
 0x2ae   :  { %v5914_v54 = vadd.f32 %v3754_v46, %v5868_v63 }
 0x2af   :  { %v3756_v31 = vpop.f32.mrf.mxu1 }
 0x2b0   :  { %v3757_v36 = vadd.f32 %v3756_v31, %v3755_v4 }
 0x2b1   :  { %v3774_v58 = vpop.f32.mrf.mxu1 }
 0x2b2   :  { %v5917_v5 = vadd.f32 %v3757_v36, %v5872_v8 }
 0x2b3   :  { %v3775_v52 = vpop.f32.mrf.mxu1 }
 0x2b4   :  { %v3776_v18 = vadd.f32 %v3775_v52, %v3774_v58 }
 0x2b5   :  { %v3777_v38 = vpop.f32.mrf.mxu1 }
 0x2b6   :  { %v5920_v63 = vadd.f32 %v3776_v18, %v5876_v62 }
 0x2b7   :  { %v3778_v61 = vpop.f32.mrf.mxu1 }
 0x2b8   :  { %v3779_v15 = vadd.f32 %v3778_v61, %v3777_v38 }
 0x2b9   :  { %v3780_v20 = vpop.f32.mrf.mxu1 }
 0x2ba   :  { %v5927_v50 = vadd.f32 %v3779_v15, %v5879_v57 }
 0x2bb   :  { %v3781_v55 = vpop.f32.mrf.mxu1 }
 0x2bc   :  { %v3782_v26 = vadd.f32 %v3781_v55, %v3780_v20 }
 0x2bd   :  { %v3783_v11 = vpop.f32.mrf.mxu1 }
 0x2bf   :  { %v3784_v39 = vpop.f32.mrf.mxu1 }
 0x2c0   :  { %v3785_v19 = vadd.f32 %v3784_v39, %v3783_v11 }
 0x2c1   :  { %v3786_v23 = vpop.f32.mrf.mxu1 }
 0x2c2   :  { %v5942_v24 = vadd.f32 %v3785_v19, %v5885_v16 }
 0x2c3   :  { %v3787_v60 = vpop.f32.mrf.mxu1 }
 0x2c4   :  { %v3788_v3 = vadd.f32 %v3787_v60, %v3786_v23 }
 0x2c5   :  { %v3789_v48 = vpop.f32.mrf.mxu1 }
 0x2c6   :  { %v5922_v7 = vadd.f32 %v3788_v3, %v3036_v42  ;;  %v5934_v42 = vadd.f32 %v3782_v26, %v5882_v51 }
 0x2c7   :  { %v3790_v8 = vpop.f32.mrf.mxu1 }
 0x2c8   :  { %v3179_v47 = vmax.f32 %v5920_v63, %v5922_v7  ;;  %v3791_v30 = vadd.f32 %v3790_v8, %v3789_v48 }
 0x2c9   :  { %v3792_v49 = vpop.f32.mrf.mxu1 }
 0x2ca   :  { %v5929_v53 = vadd.f32 %v3791_v30, %v3039_v29 }
 0x2cb   :  { %v3793_v59 = vpop.f32.mrf.mxu1 }
 0x2cc   :  { %v3180_v62 = vmax.f32 %v5927_v50, %v5929_v53  ;;  %v3794_v56 = vadd.f32 %v3793_v59, %v3792_v49 }
 0x2cd   :  { %v3795_v1 = vpop.f32.mrf.mxu1 }
 0x2ce   :  { %v5937_v10 = vadd.f32 %v3794_v56, %v5890_v44 }
 0x2cf   :  { %v3796_v33 = vpop.f32.mrf.mxu1 }
 0x2d0   :  { %v3181_v57 = vmax.f32 %v5934_v42, %v5937_v10  ;;  %v3797_v32 = vadd.f32 %v3796_v33, %v3795_v1 }
 0x2d1   :  { %v3798_v29 = vpop.f32.mrf.mxu1 }
 0x2d2   :  { %v5945_v41 = vadd.f32 %v3797_v32, %v5893_v43 }
 0x2d3   :  { %v3799_v0 = vpop.f32.mrf.mxu1 }
 0x2d4   :  { %v3182_v51 = vmax.f32 %v5942_v24, %v5945_v41  ;;  %v3800_v17 = vadd.f32 %v3799_v0, %v3798_v29 }
 0x2d5   :  { %v3801_v28 = vpop.f32.mrf.mxu1 }
 0x2d6   :  { %v5950_v44 = vadd.f32 %v3800_v17, %v5896_v34 }
 0x2d7   :  { %v3802_v6 = vpop.f32.mrf.mxu1 }
 0x2d8   :  { %v3183_v45 = vmax.f32 %v3179_v47, %v5950_v44  ;;  %v3803_v22 = vadd.f32 %v3802_v6, %v3801_v28 }
 0x2d9   :  { %v3804_v21 = vpop.f32.mrf.mxu1 }
 0x2da   :  { %v5954_v16 = vadd.f32 %v3803_v22, %v5899_v13 }
 0x2db   :  { %v3805_v9 = vpop.f32.mrf.mxu1 }
 0x2dc   :  { %v3184_v43 = vmax.f32 %v3180_v62, %v5954_v16  ;;  %v3806_v27 = vadd.f32 %v3805_v9, %v3804_v21 }
 0x2dd   :  { %v3807_v35 = vpop.f32.mrf.mxu1 }
 0x2de   :  { %v5958_v12 = vadd.f32 %v3806_v27, %v5902_v2 }
 0x2df   :  { %v3808_v40 = vpop.f32.mrf.mxu1 }
 0x2e0   :  { %v3185_v34 = vmax.f32 %v3181_v57, %v5958_v12  ;;  %v3809_v46 = vadd.f32 %v3808_v40, %v3807_v35 }
 0x2e1   :  { %v3810_v4 = vpop.f32.mrf.mxu1 }
 0x2e2   :  { %v5962_v31 = vadd.f32 %v3809_v46, %v5905_v37 }
 0x2e3   :  { %v3811_v36 = vpop.f32.mrf.mxu1 }
 0x2e4   :  { %v3186_v13 = vmax.f32 %v3182_v51, %v5962_v31  ;;  %v3812_v58 = vadd.f32 %v3811_v36, %v3810_v4 }
 0x2e5   :  { %v3813_v52 = vpop.f32.mrf.mxu1 }
 0x2e6   :  { %v5966_v38 = vadd.f32 %v3812_v58, %v5908_v25 }
 0x2e7   :  { %v3814_v61 = vpop.f32.mrf.mxu1 }
 0x2e8   :  { %v3187_v2 = vmax.f32 %v3183_v45, %v5966_v38  ;;  %v3815_v20 = vadd.f32 %v3814_v61, %v3813_v52 }
 0x2e9   :  { %v3816_v55 = vpop.f32.mrf.mxu1 }
 0x2ea   :  { %v5970_v11 = vadd.f32 %v3815_v20, %v5911_v14 }
 0x2eb   :  { %v3817_v39 = vpop.f32.mrf.mxu1 }
 0x2ec   :  { %v3188_v37 = vmax.f32 %v3184_v43, %v5970_v11  ;;  %v3818_v23 = vadd.f32 %v3817_v39, %v3816_v55 }
 0x2ed   :  { %v3819_v18 = vpop.f32.mrf.mxu1 }
 0x2ee   :  { %v3191_v60 = vmax.f32 %v3187_v2, %v3188_v37  ;;  %v5974_v3 = vadd.f32 %v3818_v23, %v5914_v54 }
 0x2ef   :  { %v3820_v48 = vpop.f32.mrf.mxu1 }
 0x2f0   :  { %v3189_v25 = vmax.f32 %v3185_v34, %v5974_v3  ;;  %v3821_v15 = vadd.f32 %v3820_v48, %v3819_v18 }
 0x2f2   :  { %v5978_v8 = vadd.f32 %v3821_v15, %v5917_v5 }
 0x2f4   :  { %v3190_v47 = vmax.f32 %v3186_v13, %v5978_v8 }
 0x2f6   :  { %v3192_v14 = vmax.f32 %v3189_v25, %v3190_v47 }
 0x2f8   :  { %v3193_v30 = vmax.f32 %v3191_v60, %v3192_v14 }
 0x2fa   :  { %v3194_v49 = vrot.slane %v3193_v30, 4 }
 0x2fc   :  { %v3195_v26 = vmax.f32 %v3193_v30, %v3194_v49 }
 0x2fe   :  { %v3196_v59 = vrot.slane %v3195_v26, 2 }
 0x300   :  { %v3197_v62 = vmax.f32 %v3195_v26, %v3196_v59 }
 0x302   :  { %v3198_v56 = vrot.slane %v3197_v62, 1 }
 0x304   :  { %v3199_v1 = vmax.f32 %v3197_v62, %v3198_v56 }
 0x306   :  { %v3200_v54 = vsub.f32 %v5920_v63, %v3199_v1  ;;  %v3201_v19 = vsub.f32 %v5927_v50, %v3199_v1  ;;  %v3202_v33 = vsub.f32 %v5934_v42, %v3199_v1  ;;  %v3203_v57 = vsub.f32 %v5942_v24, %v3199_v1 }
 0x307   :  { %v3204_v5 = vsub.f32 %v5922_v7, %v3199_v1  ;;  %v3205_v32 = vsub.f32 %v5929_v53, %v3199_v1  ;;  %v3206_v29 = vsub.f32 %v5937_v10, %v3199_v1  ;;  %v3207_v0 = vsub.f32 %v5945_v41, %v3199_v1 }
 0x308   :  { %v3208_v51 = vsub.f32 %v5950_v44, %v3199_v1  ;;  %v3209_v17 = vsub.f32 %v5954_v16, %v3199_v1  ;;  %v3210_v63 = vsub.f32 %v5958_v12, %v3199_v1  ;;  %v3211_v50 = vsub.f32 %v5962_v31, %v3199_v1 }
 0x309   :  { %v3212_v42 = vsub.f32 %v5966_v38, %v3199_v1  ;;  %v3213_v24 = vsub.f32 %v5970_v11, %v3199_v1  ;;  %v3214_v7 = vsub.f32 %v5974_v3, %v3199_v1  ;;  %v3215_v53 = vsub.f32 %v5978_v8, %v3199_v1 }
 0x30a   :  { %v3216_v28 = vmul.f32 1.442695, %v3200_v54  ;;  %v3218_v10 = vmul.f32 1.442695, %v3201_v19  ;;  %v3220_v6 = vmul.f32 1.442695, %v3202_v33 }
 0x30b   :  { %v3222_v41 = vmul.f32 1.442695, %v3203_v57  ;;  %v3224_v44 = vmul.f32 1.442695, %v3204_v5  ;;  %v3226_v45 = vmul.f32 1.442695, %v3205_v32 }
 0x30c   :  { %4039 = vpow2.f32 %v3216_v28  ;;  %v3228_v22 = vmul.f32 1.442695, %v3206_v29  ;;  %v3230_v21 = vmul.f32 1.442695, %v3207_v0  ;;  %v3232_v16 = vmul.f32 1.442695, %v3208_v51 }
 0x30d   :  { %4041 = vpow2.f32 %v3218_v10  ;;  %v3234_v43 = vmul.f32 1.442695, %v3209_v17  ;;  %v3236_v35 = vmul.f32 1.442695, %v3210_v63  ;;  %v3238_v34 = vmul.f32 1.442695, %v3211_v50 }
 0x30e   :  { %4043 = vpow2.f32 %v3220_v6  ;;  %v3240_v31 = vmul.f32 1.442695, %v3212_v42  ;;  %v3242_v58 = vmul.f32 1.442695, %v3213_v24  ;;  %v3244_v61 = vmul.f32 1.442695, %v3214_v7 }
 0x30f   :  { %4045 = vpow2.f32 %v3222_v41  ;;  %v3246_v55 = vmul.f32 1.442695, %v3215_v53 }
 0x310   :  { %4047 = vpow2.f32 %v3224_v44 }
 0x311   :  { %4049 = vpow2.f32 %v3226_v45 }
 0x312   :  { %4051 = vpow2.f32 %v3228_v22 }
 0x313   :  { %4053 = vpow2.f32 %v3230_v21 }
 0x314   :  { %4055 = vpow2.f32 %v3232_v16 }
 0x315   :  { %4057 = vpow2.f32 %v3234_v43 }
 0x316   :  { %4059 = vpow2.f32 %v3236_v35 }
 0x317   :  { %4061 = vpow2.f32 %v3238_v34 }
 0x318   :  { %4063 = vpow2.f32 %v3240_v31 }
 0x319   :  { %v4040_v9 = vpop.eup %4039  ;;  %4065 = vpow2.f32 %v3242_v58 }
 0x31a   :  { %v4042_v27 = vpop.eup %4041  ;;  %4067 = vpow2.f32 %v3244_v61 }
 0x31b   :  { %v3248_v12 = vadd.f32 %v4042_v27, %v4040_v9  ;;  %v4044_v40 = vpop.eup %4043  ;;  %4069 = vpow2.f32 %v3246_v55 }
 0x31c   :  { %v4046_v4 = vpop.eup %4045 }
 0x31d   :  { %v3249_v46 = vadd.f32 %v4044_v40, %v3248_v12  ;;  %v4048_v13 = vpop.eup %4047 }
 0x31e   :  { %v4050_v38 = vpop.eup %4049 }
 0x31f   :  { %v3250_v36 = vadd.f32 %v4046_v4, %v3249_v46  ;;  %v4052_v20 = vpop.eup %4051 }
 0x320   :  { %v4054_v39 = vpop.eup %4053 }
 0x321   :  { %v3251_v52 = vadd.f32 %v4048_v13, %v3250_v36  ;;  %v4056_v23 = vpop.eup %4055 }
 0x322   :  { %v4058_v60 = vpop.eup %4057 }
 0x323   :  { %v3252_v2 = vadd.f32 %v4050_v38, %v3251_v52  ;;  %v4060_v48 = vpop.eup %4059 }
 0x324   :  { %v4062_v15 = vpop.eup %4061 }
 0x325   :  { %v3253_v11 = vadd.f32 %v4052_v20, %v3252_v2  ;;  %v4064_v47 = vpop.eup %4063 }
 0x326   :  { %v4066_v30 = vpop.eup %4065 }
 0x327   :  { %v3254_v37 = vadd.f32 %v4054_v39, %v3253_v11  ;;  %v4068_v26 = vpop.eup %4067 }
 0x328   :  { %v4070_v62 = vpop.eup %4069 }
 0x329   :  { %v3255_v18 = vadd.f32 %v4056_v23, %v3254_v37 }
 0x32b   :  { %v3256_v3 = vadd.f32 %v4058_v60, %v3255_v18 }
 0x32d   :  { %v3257_v25 = vadd.f32 %v4060_v48, %v3256_v3 }
 0x32f   :  { %v3258_v8 = vadd.f32 %v4062_v15, %v3257_v25 }
 0x331   :  { %v3259_v14 = vadd.f32 %v4064_v47, %v3258_v8 }
 0x333   :  { %v3260_v49 = vadd.f32 %v4066_v30, %v3259_v14 }
 0x335   :  { %v3261_v59 = vadd.f32 %v4068_v26, %v3260_v49 }
 0x337   :  { %v3262_v56 = vadd.f32 %v4070_v62, %v3261_v59 }
 0x339   :  { %v3263_v1 = vrot.slane %v3262_v56, 4 }
 0x33b   :  { %v3264_v54 = vadd.f32 %v3263_v1, %v3262_v56 }
 0x33d   :  { %v3265_v19 = vrot.slane %v3264_v54, 2 }
 0x33f   :  { %v3266_v33 = vadd.f32 %v3265_v19, %v3264_v54 }
 0x341   :  { %v3267_v57 = vrot.slane %v3266_v33, 1 }
 0x343   :  { %v3268_v5 = vadd.f32 %v3267_v57, %v3266_v33 }
 0x345   :  { %4071 = vrcp.f32 %v3268_v5 }
 0x352   :  { %v4072_v32 = vpop.eup %4071 }
 0x353   :  { %v3270_v29 = vmul.f32 %v4072_v32, %v4040_v9  ;;  %v3271_v0 = vmul.f32 %v4072_v32, %v4042_v27  ;;  %v3272_v51 = vmul.f32 %v4072_v32, %v4044_v40  ;;  %v3273_v17 = vmul.f32 %v4072_v32, %v4046_v4 }
 0x354   :  { %v3274_v63 = vmul.f32 %v4072_v32, %v4048_v13  ;;  %v3275_v50 = vmul.f32 %v4072_v32, %v4050_v38  ;;  %v3276_v42 = vmul.f32 %v4072_v32, %v4052_v20  ;;  %v3277_v24 = vmul.f32 %v4072_v32, %v4054_v39 }
 0x355   :  { %v3278_v7 = vmul.f32 %v4072_v32, %v4056_v23  ;;  %v3279_v53 = vmul.f32 %v4072_v32, %v4058_v60  ;;  %v3280_v28 = vmul.f32 %v4072_v32, %v4060_v48  ;;  %v3281_v10 = vmul.f32 %v4072_v32, %v4062_v15  ;;  %3286 = vst [vmem:[%s6050_s5] sm:$0xff] %v3270_v29 }
 0x356   :  { %3287 = vst [vmem:[%s6050_s5 + $0x8] sm:$0xff] %v3271_v0  ;;  %3288 = vst [vmem:[%s6050_s5 + $0x10] sm:$0xff] %v3272_v51  ;;  %v3282_v6 = vmul.f32 %v4072_v32, %v4064_v47  ;;  %v3283_v41 = vmul.f32 %v4072_v32, %v4066_v30  ;;  %v3284_v44 = vmul.f32 %v4072_v32, %v4068_v26 }
 0x357   :  { %3289 = vst [vmem:[%s6050_s5 + $0x18] sm:$0xff] %v3273_v17  ;;  %v3285_v45 = vmul.f32 %v4072_v32, %v4070_v62  ;;  %3290 = vst [vmem:[%s6050_s5 + $0x20] sm:$0xff] %v3274_v63 }
 0x358   :  { %3291 = vst [vmem:[%s6050_s5 + $0x28] sm:$0xff] %v3275_v50  ;;  %3292 = vst [vmem:[%s6050_s5 + $0x30] sm:$0xff] %v3276_v42 }
 0x359   :  { %3293 = vst [vmem:[%s6050_s5 + $0x38] sm:$0xff] %v3277_v24  ;;  %3294 = vst [vmem:[%s6050_s5 + $0x40] sm:$0xff] %v3278_v7 }
 0x35a   :  { %3295 = vst [vmem:[%s6050_s5 + $0x48] sm:$0xff] %v3279_v53  ;;  %3296 = vst [vmem:[%s6050_s5 + $0x50] sm:$0xff] %v3280_v28 }
 0x35b   :  { %3297 = vst [vmem:[%s6050_s5 + $0x58] sm:$0xff] %v3281_v10  ;;  %3298 = vst [vmem:[%s6050_s5 + $0x60] sm:$0xff] %v3282_v6 }
 0x35c   :  { %3299 = vst [vmem:[%s6050_s5 + $0x68] sm:$0xff] %v3283_v41  ;;  %3300 = vst [vmem:[%s6050_s5 + $0x70] sm:$0xff] %v3284_v44 }
 0x35d   :  { %3301 = vst [vmem:[%s6050_s5 + $0x78] sm:$0xff] %v3285_v45 }

</bundles_post_ra>
